<compile_context>
chip_gen: v7x
topology: tpu7x:2x2x1
jax: 0.10.0
libtpu: 0.0.40
codegen_flags: <defaults>
</compile_context>

<pallas_src>
import jax
import jax.numpy as jnp
from jax.experimental import pallas as pl
from jax.experimental.pallas import tpu as pltpu

# ----------------------------------------------------------------------------
# configuration (module constructor defaults)
# ----------------------------------------------------------------------------
LATENT = 128
HIDDEN = 128
HALF = HIDDEN // 2                  # 64
BATCH = 2
NUM_HEADS = 4                       # age, intensity, stimulus_rate, hearing_loss
HEAD_OUT_DIMS = (1, 1, 1, 5)        # per-head output widths
OUT_W = 16                          # packed output slab width
# packed-output column layout:
#   0: age   1: intensity   2: stimulus_rate   3..7: hearing_loss probs
#   8: hearing-loss argmax (float)             9..15: zero padding

_VMEM = pl.BlockSpec(memory_space=pltpu.MemorySpace.VMEM)
_SQRT1_2 = 0.7071067811865476
_EPS = 1e-5                         # torch LayerNorm default


# ----------------------------------------------------------------------------
# in-kernel elementwise helpers (only Mosaic-lowerable ops)
# ----------------------------------------------------------------------------
def _erf(x):
    # float32-accurate rational approximation (Numerical Recipes 6.2).
    a = jnp.abs(x)
    t = 1.0 / (1.0 + 0.5 * a)
    poly = -1.26551223 + t * (1.00002368 + t * (0.37409196 + t * (0.09678418 + t * (
        -0.18628806 + t * (0.27886807 + t * (-1.13520398 + t * (1.48851587 + t * (
            -0.82215223 + t * 0.17087277))))))))
    y = t * jnp.exp(-a * a + poly)
    return jnp.where(x >= 0.0, 1.0 - y, y - 1.0)


def _gelu(x):  # exact-erf GELU (PyTorch nn.GELU default)
    return 0.5 * x * (1.0 + _erf(x * _SQRT1_2))


def _sigmoid(x):
    return 1.0 / (1.0 + jnp.exp(-x))


def _layernorm(x, g, b):
    mean = jnp.mean(x, axis=-1, keepdims=True)
    var = jnp.mean((x - mean) ** 2, axis=-1, keepdims=True)   # biased, like torch
    return (x - mean) * jax.lax.rsqrt(var + _EPS) * g + b


# ----------------------------------------------------------------------------
# the single fused kernel
# ----------------------------------------------------------------------------
# vecs_ref row layout ([10, 256]):
#   0: b1   1: g1   2: be1   3: b2   4: g2   5: be2     (first 128 lanes used)
#   6: bh1_cat (256)   7: gh_cat (256)   8: beh_cat (256)
#   9: bh2_packed (first OUT_W lanes used)
def _decoder_kernel(z_ref, w_enc_ref, wh1_ref, wh2_ref, vecs_ref, out_ref):
    f32 = jnp.float32
    H = HIDDEN

    def enc_block(x, w, row):
        b = vecs_ref[row + 0:row + 1, 0:H]
        g = vecs_ref[row + 1:row + 2, 0:H]
        beta = vecs_ref[row + 2:row + 3, 0:H]
        h = jnp.dot(x, w, preferred_element_type=f32) + b
        return _gelu(_layernorm(h, g, beta))

    # shared_encoder: two (Linear + LayerNorm + GELU [+ Dropout=id]) blocks
    shared = enc_block(z_ref[...], w_enc_ref[0], 0)
    shared = enc_block(shared, w_enc_ref[1], 3)

    # --- all four heads' first Linear fused into ONE [128, 256] matmul ------
    bh1 = vecs_ref[6:7, :]
    gh = vecs_ref[7:8, :]
    beh = vecs_ref[8:9, :]
    h = jnp.dot(shared, wh1_ref[...], preferred_element_type=f32) + bh1   # [B,256]

    # per-head (64-lane segment) LayerNorm via lane-masked reductions
    lane = jax.lax.broadcasted_iota(jnp.int32, h.shape, 1)
    inv = 1.0 / float(HALF)
    mean_bc = jnp.zeros_like(h)
    for s in range(NUM_HEADS):
        m = (lane >= s * HALF) & (lane < (s + 1) * HALF)
        mu = jnp.sum(jnp.where(m, h, 0.0), axis=-1, keepdims=True) * inv
        mean_bc = jnp.where(m, mu, mean_bc)
    d = h - mean_bc
    var_bc = jnp.zeros_like(h)
    for s in range(NUM_HEADS):
        m = (lane >= s * HALF) & (lane < (s + 1) * HALF)
        v = jnp.sum(jnp.where(m, d * d, 0.0), axis=-1, keepdims=True) * inv
        var_bc = jnp.where(m, v, var_bc)
    h_act = _gelu(d * jax.lax.rsqrt(var_bc + _EPS) * gh + beh)            # [B,256]

    # --- all four heads' second Linear fused into ONE block-structured ------
    # [256, 16] projection; the result is already the packed logits slab.
    bh2 = vecs_ref[9:10, 0:OUT_W]
    logits = jnp.dot(h_act, wh2_ref[...], preferred_element_type=f32) + bh2  # [B,16]

    lane16 = jax.lax.broadcasted_iota(jnp.int32, logits.shape, 1)

    # scalar heads: Sigmoid + per-column affine rescale (cols 0..2)
    sig = _sigmoid(logits)
    scale = jnp.where(lane16 == 0, 100.0, jnp.where(lane16 == 1, 80.0, 90.0))
    offs = jnp.where(lane16 == 0, 0.0, jnp.where(lane16 == 1, 20.0, 10.0))
    scalars = sig * scale + offs

    # hearing-loss head: softmax over cols 3..7
    is_hl = (lane16 >= 3) & (lane16 < 8)
    masked = jnp.where(is_hl, logits, -1e30)
    mx = jnp.max(masked, axis=-1, keepdims=True)
    e = jnp.where(is_hl, jnp.exp(logits - mx), 0.0)
    probs = e / jnp.sum(e, axis=-1, keepdims=True)

    # argmax on the logits (softmax is monotone), first-max index, as float
    idxf = (lane16 - 3).astype(f32)
    cand = jnp.where(is_hl & (logits >= mx), idxf, jnp.float32(1e9))
    cat = jnp.min(cand, axis=-1, keepdims=True)                           # [B,1]

    out = jnp.where(lane16 < 3, scalars,
          jnp.where(lane16 < 8, probs,
          jnp.where(lane16 == 8, cat, 0.0)))
    out_ref[...] = out                                                    # one store


def static_parameter_decoder_forward(z, packed):
    B = z.shape[0]
    out = pl.pallas_call(
        _decoder_kernel,
        out_shape=jax.ShapeDtypeStruct((B, OUT_W), jnp.float32),
        in_specs=[_VMEM] * 5,
        out_specs=_VMEM,
    )(z.astype(jnp.float32),
      packed["w_enc"], packed["wh1"], packed["wh2"], packed["vecs"])
    return {
        "age": out[:, 0],
        "intensity": out[:, 1],
        "stimulus_rate": out[:, 2],
        "hearing_loss_probs": out[:, 3:8],
        "hear_loss": out[:, 8],
    }


# ----------------------------------------------------------------------------
# parameter init in the module's "natural" per-head layout ([in, out] weights)
# ----------------------------------------------------------------------------
def init_params(key):
    L, H, Hh = LATENT, HIDDEN, HALF
    keys = iter(jax.random.split(key, 64))

    def w(shape, scale=0.05):
        return (scale * jax.random.normal(next(keys), shape)).astype(jnp.float32)

    p = {
        "w1": w((L, H)), "b1": w((H,)),
        "g1": 1.0 + w((H,)), "be1": w((H,)),
        "w2": w((H, H)), "b2": w((H,)),
        "g2": 1.0 + w((H,)), "be2": w((H,)),
        "wh1": [w((H, Hh)) for _ in range(NUM_HEADS)],
        "bh1": [w((Hh,)) for _ in range(NUM_HEADS)],
        "gh": [1.0 + w((Hh,)) for _ in range(NUM_HEADS)],
        "beh": [w((Hh,)) for _ in range(NUM_HEADS)],
        "wh2": [w((Hh, od)) for od in HEAD_OUT_DIMS],
        "bh2": [w((od,)) for od in HEAD_OUT_DIMS],
    }
    return p


# ----------------------------------------------------------------------------
# pack natural params into the 5 fused kernel inputs (done once, outside jit)
# ----------------------------------------------------------------------------
def pack_params(p):
    Hh = HALF
    w_enc = jnp.stack([p["w1"], p["w2"]])                       # [2,128,128]
    wh1_cat = jnp.concatenate(p["wh1"], axis=1)                 # [128,256]

    wh2 = jnp.zeros((NUM_HEADS * Hh, OUT_W), jnp.float32)       # block structured
    bh2 = jnp.zeros((OUT_W,), jnp.float32)
    col = 0
    for i, od in enumerate(HEAD_OUT_DIMS):
        wh2 = wh2.at[i * Hh:(i + 1) * Hh, col:col + od].set(p["wh2"][i])
        bh2 = bh2.at[col:col + od].set(p["bh2"][i])
        col += od

    def pad256(v):
        return jnp.pad(v, (0, 256 - v.shape[0]))

    vecs = jnp.stack([
        pad256(p["b1"]), pad256(p["g1"]), pad256(p["be1"]),
        pad256(p["b2"]), pad256(p["g2"]), pad256(p["be2"]),
        jnp.concatenate(p["bh1"]), jnp.concatenate(p["gh"]),
        jnp.concatenate(p["beh"]), pad256(bh2),
    ])                                                           # [10,256]
    return dict(w_enc=w_enc, wh1=wh1_cat, wh2=wh2, vecs=vecs)


# ----------------------------------------------------------------------------
# pure-JAX reference (exact erf, per-head layout) for correctness check
# ----------------------------------------------------------------------------
def _reference_forward(z, p):
    def gelu(x):
        return 0.5 * x * (1.0 + jax.scipy.special.erf(x * _SQRT1_2))

    def ln(x, g, b):
        mu = jnp.mean(x, -1, keepdims=True)
        var = jnp.mean((x - mu) ** 2, -1, keepdims=True)
        return (x - mu) / jnp.sqrt(var + _EPS) * g + b

    def block(x, w, b, g, beta):
        return gelu(ln(x @ w + b, g, beta))

    shared = block(z, p["w1"], p["b1"], p["g1"], p["be1"])
    shared = block(shared, p["w2"], p["b2"], p["g2"], p["be2"])
    outs = []
    for i in range(NUM_HEADS):
        hi = block(shared, p["wh1"][i], p["bh1"][i], p["gh"][i], p["beh"][i])
        outs.append(hi @ p["wh2"][i] + p["bh2"][i])
    sig = jax.nn.sigmoid
    probs = jax.nn.softmax(outs[3], axis=-1)
    return {
        "age": 100.0 * sig(outs[0][:, 0]),
        "intensity": 80.0 * sig(outs[1][:, 0]) + 20.0,
        "stimulus_rate": 90.0 * sig(outs[2][:, 0]) + 10.0,
        "hear_loss": jnp.argmax(probs, axis=-1).astype(jnp.float32),
        "hearing_loss_probs": probs,
    }


# ----------------------------------------------------------------------------
if __name__ == "__main__":
    key = jax.random.PRNGKey(0)
    kz, kp = jax.random.split(key)
    z = jax.random.normal(kz, (BATCH, LATENT), dtype=jnp.float32)
    params = init_params(kp)
    packed = pack_params(params)

    fwd = jax.jit(static_parameter_decoder_forward)
    out = fwd(z, packed)
    out = jax.block_until_ready(out)

    assert out["age"].shape == (BATCH,)
    assert out["intensity"].shape == (BATCH,)
    assert out["stimulus_rate"].shape == (BATCH,)
    assert out["hear_loss"].shape == (BATCH,)
    assert out["hearing_loss_probs"].shape == (BATCH, 5)
    for v in out.values():
        assert bool(jnp.all(jnp.isfinite(v)))

    ref = _reference_forward(z, params)
    for k in ("age", "intensity", "stimulus_rate", "hearing_loss_probs"):
        assert bool(jnp.allclose(out[k], ref[k], atol=1e-3, rtol=1e-3)), k
    assert bool(jnp.all(out["hear_loss"] == ref["hear_loss"]))

    print("KERNEL_OK")
</pallas_src>

<mosaic_0001>
module attributes {stable_mosaic.version = 11 : i64} {
  func.func @_decoder_kernel(%arg0: memref<2x128xf32, #tpu.memory_space<vmem>>, %arg1: memref<2x128x128xf32, #tpu.memory_space<vmem>>, %arg2: memref<128x256xf32, #tpu.memory_space<vmem>>, %arg3: memref<256x16xf32, #tpu.memory_space<vmem>>, %arg4: memref<10x256xf32, #tpu.memory_space<vmem>>, %arg5: memref<2x16xf32, #tpu.memory_space<vmem>>) attributes {dimension_semantics = [], scalar_prefetch = 0 : i64, scratch_operands = 0 : i64, tpu.core_type = #tpu.core_type<tc>} {
    %c0 = arith.constant 0 : index
    %c0_0 = arith.constant 0 : index
    %0 = vector.load %arg0[%c0, %c0_0] : memref<2x128xf32, #tpu.memory_space<vmem>>, vector<2x128xf32>
    %c0_1 = arith.constant 0 : index
    %c0_2 = arith.constant 0 : index
    %c0_3 = arith.constant 0 : index
    %1 = vector.load %arg1[%c0_1, %c0_2, %c0_3] : memref<2x128x128xf32, #tpu.memory_space<vmem>>, vector<1x128x128xf32>
    %2 = vector.shape_cast %1 : vector<1x128x128xf32> to vector<128x128xf32>
    %c0_4 = arith.constant 0 : index
    %c0_5 = arith.constant 0 : index
    %3 = vector.load %arg4[%c0_4, %c0_5] : memref<10x256xf32, #tpu.memory_space<vmem>>, vector<1x128xf32>
    %c1 = arith.constant 1 : index
    %c0_6 = arith.constant 0 : index
    %4 = vector.load %arg4[%c1, %c0_6] : memref<10x256xf32, #tpu.memory_space<vmem>>, vector<1x128xf32>
    %c2 = arith.constant 2 : index
    %c0_7 = arith.constant 0 : index
    %5 = vector.load %arg4[%c2, %c0_7] : memref<10x256xf32, #tpu.memory_space<vmem>>, vector<1x128xf32>
    %cst = arith.constant dense<0.000000e+00> : vector<2x128xf32>
    %6 = tpu.matmul %0, %2, %cst {dimension_numbers = #tpu.dot_dimension_numbers<[1], [0], [0], [1], [0, 0, 1, 1], [], []>} : vector<2x128xf32>, vector<128x128xf32>, vector<2x128xf32> -> vector<2x128xf32>
    %7 = vector.broadcast %3 : vector<1x128xf32> to vector<2x128xf32>
    %8 = arith.addf %6, %7 : vector<2x128xf32>
    %cst_8 = arith.constant dense<0.000000e+00> : vector<2xf32>
    %9 = vector.multi_reduction <add>, %8, %cst_8 [1] : vector<2x128xf32> to vector<2xf32>
    %10 = vector.shape_cast %9 : vector<2xf32> to vector<2x1xf32>
    %cst_9 = arith.constant 1.280000e+02 : f32
    %11 = vector.broadcast %cst_9 : f32 to vector<2x1xf32>
    %12 = arith.divf %10, %11 : vector<2x1xf32>
    %13 = vector.broadcast %12 : vector<2x1xf32> to vector<2x128xf32>
    %14 = arith.subf %8, %13 : vector<2x128xf32>
    %15 = arith.mulf %14, %14 : vector<2x128xf32>
    %cst_10 = arith.constant dense<0.000000e+00> : vector<2xf32>
    %16 = vector.multi_reduction <add>, %15, %cst_10 [1] : vector<2x128xf32> to vector<2xf32>
    %17 = vector.shape_cast %16 : vector<2xf32> to vector<2x1xf32>
    %cst_11 = arith.constant 1.280000e+02 : f32
    %18 = vector.broadcast %cst_11 : f32 to vector<2x1xf32>
    %19 = arith.divf %17, %18 : vector<2x1xf32>
    %20 = vector.broadcast %12 : vector<2x1xf32> to vector<2x128xf32>
    %21 = arith.subf %8, %20 : vector<2x128xf32>
    %cst_12 = arith.constant 9.99999974E-6 : f32
    %22 = vector.broadcast %cst_12 : f32 to vector<2x1xf32>
    %23 = arith.addf %19, %22 : vector<2x1xf32>
    %24 = math.rsqrt %23 : vector<2x1xf32>
    %25 = vector.broadcast %24 : vector<2x1xf32> to vector<2x128xf32>
    %26 = arith.mulf %21, %25 : vector<2x128xf32>
    %27 = vector.broadcast %4 : vector<1x128xf32> to vector<2x128xf32>
    %28 = arith.mulf %26, %27 : vector<2x128xf32>
    %29 = vector.broadcast %5 : vector<1x128xf32> to vector<2x128xf32>
    %30 = arith.addf %28, %29 : vector<2x128xf32>
    %cst_13 = arith.constant 5.000000e-01 : f32
    %31 = vector.broadcast %cst_13 : f32 to vector<2x128xf32>
    %32 = arith.mulf %31, %30 : vector<2x128xf32>
    %cst_14 = arith.constant 0.707106769 : f32
    %33 = vector.broadcast %cst_14 : f32 to vector<2x128xf32>
    %34 = arith.mulf %30, %33 : vector<2x128xf32>
    %35 = math.absf %34 : vector<2x128xf32>
    %cst_15 = arith.constant 5.000000e-01 : f32
    %36 = vector.broadcast %cst_15 : f32 to vector<2x128xf32>
    %37 = arith.mulf %36, %35 : vector<2x128xf32>
    %cst_16 = arith.constant 1.000000e+00 : f32
    %38 = vector.broadcast %cst_16 : f32 to vector<2x128xf32>
    %39 = arith.addf %38, %37 : vector<2x128xf32>
    %cst_17 = arith.constant 1.000000e+00 : f32
    %40 = vector.broadcast %cst_17 : f32 to vector<2x128xf32>
    %41 = arith.divf %40, %39 : vector<2x128xf32>
    %cst_18 = arith.constant 0.170872763 : f32
    %42 = vector.broadcast %cst_18 : f32 to vector<2x128xf32>
    %43 = arith.mulf %41, %42 : vector<2x128xf32>
    %cst_19 = arith.constant -0.822152256 : f32
    %44 = vector.broadcast %cst_19 : f32 to vector<2x128xf32>
    %45 = arith.addf %44, %43 : vector<2x128xf32>
    %46 = arith.mulf %41, %45 : vector<2x128xf32>
    %cst_20 = arith.constant 1.48851585 : f32
    %47 = vector.broadcast %cst_20 : f32 to vector<2x128xf32>
    %48 = arith.addf %47, %46 : vector<2x128xf32>
    %49 = arith.mulf %41, %48 : vector<2x128xf32>
    %cst_21 = arith.constant -1.13520396 : f32
    %50 = vector.broadcast %cst_21 : f32 to vector<2x128xf32>
    %51 = arith.addf %50, %49 : vector<2x128xf32>
    %52 = arith.mulf %41, %51 : vector<2x128xf32>
    %cst_22 = arith.constant 0.278868079 : f32
    %53 = vector.broadcast %cst_22 : f32 to vector<2x128xf32>
    %54 = arith.addf %53, %52 : vector<2x128xf32>
    %55 = arith.mulf %41, %54 : vector<2x128xf32>
    %cst_23 = arith.constant -0.186288059 : f32
    %56 = vector.broadcast %cst_23 : f32 to vector<2x128xf32>
    %57 = arith.addf %56, %55 : vector<2x128xf32>
    %58 = arith.mulf %41, %57 : vector<2x128xf32>
    %cst_24 = arith.constant 0.0967841818 : f32
    %59 = vector.broadcast %cst_24 : f32 to vector<2x128xf32>
    %60 = arith.addf %59, %58 : vector<2x128xf32>
    %61 = arith.mulf %41, %60 : vector<2x128xf32>
    %cst_25 = arith.constant 0.374091953 : f32
    %62 = vector.broadcast %cst_25 : f32 to vector<2x128xf32>
    %63 = arith.addf %62, %61 : vector<2x128xf32>
    %64 = arith.mulf %41, %63 : vector<2x128xf32>
    %cst_26 = arith.constant 1.00002372 : f32
    %65 = vector.broadcast %cst_26 : f32 to vector<2x128xf32>
    %66 = arith.addf %65, %64 : vector<2x128xf32>
    %67 = arith.mulf %41, %66 : vector<2x128xf32>
    %cst_27 = arith.constant -1.26551223 : f32
    %68 = vector.broadcast %cst_27 : f32 to vector<2x128xf32>
    %69 = arith.addf %68, %67 : vector<2x128xf32>
    %cst_28 = arith.constant 0.000000e+00 : f32
    %70 = vector.broadcast %cst_28 : f32 to vector<2x128xf32>
    %71 = arith.subf %70, %35 : vector<2x128xf32>
    %72 = arith.mulf %71, %35 : vector<2x128xf32>
    %73 = arith.addf %72, %69 : vector<2x128xf32>
    %74 = math.exp %73 : vector<2x128xf32>
    %75 = arith.mulf %41, %74 : vector<2x128xf32>
    %cst_29 = arith.constant 0.000000e+00 : f32
    %76 = vector.broadcast %cst_29 : f32 to vector<2x128xf32>
    %77 = arith.cmpf oge, %34, %76 : vector<2x128xf32>
    %cst_30 = arith.constant 1.000000e+00 : f32
    %78 = vector.broadcast %cst_30 : f32 to vector<2x128xf32>
    %79 = arith.subf %78, %75 : vector<2x128xf32>
    %cst_31 = arith.constant 1.000000e+00 : f32
    %80 = vector.broadcast %cst_31 : f32 to vector<2x128xf32>
    %81 = arith.subf %75, %80 : vector<2x128xf32>
    %82 = arith.select %77, %79, %81 : vector<2x128xi1>, vector<2x128xf32>
    %cst_32 = arith.constant 1.000000e+00 : f32
    %83 = vector.broadcast %cst_32 : f32 to vector<2x128xf32>
    %84 = arith.addf %83, %82 : vector<2x128xf32>
    %85 = arith.mulf %32, %84 : vector<2x128xf32>
    %c1_33 = arith.constant 1 : index
    %c0_34 = arith.constant 0 : index
    %c0_35 = arith.constant 0 : index
    %86 = vector.load %arg1[%c1_33, %c0_34, %c0_35] : memref<2x128x128xf32, #tpu.memory_space<vmem>>, vector<1x128x128xf32>
    %87 = vector.shape_cast %86 : vector<1x128x128xf32> to vector<128x128xf32>
    %c3 = arith.constant 3 : index
    %c0_36 = arith.constant 0 : index
    %88 = vector.load %arg4[%c3, %c0_36] : memref<10x256xf32, #tpu.memory_space<vmem>>, vector<1x128xf32>
    %c4 = arith.constant 4 : index
    %c0_37 = arith.constant 0 : index
    %89 = vector.load %arg4[%c4, %c0_37] : memref<10x256xf32, #tpu.memory_space<vmem>>, vector<1x128xf32>
    %c5 = arith.constant 5 : index
    %c0_38 = arith.constant 0 : index
    %90 = vector.load %arg4[%c5, %c0_38] : memref<10x256xf32, #tpu.memory_space<vmem>>, vector<1x128xf32>
    %cst_39 = arith.constant dense<0.000000e+00> : vector<2x128xf32>
    %91 = tpu.matmul %85, %87, %cst_39 {dimension_numbers = #tpu.dot_dimension_numbers<[1], [0], [0], [1], [0, 0, 1, 1], [], []>} : vector<2x128xf32>, vector<128x128xf32>, vector<2x128xf32> -> vector<2x128xf32>
    %92 = vector.broadcast %88 : vector<1x128xf32> to vector<2x128xf32>
    %93 = arith.addf %91, %92 : vector<2x128xf32>
    %cst_40 = arith.constant dense<0.000000e+00> : vector<2xf32>
    %94 = vector.multi_reduction <add>, %93, %cst_40 [1] : vector<2x128xf32> to vector<2xf32>
    %95 = vector.shape_cast %94 : vector<2xf32> to vector<2x1xf32>
    %cst_41 = arith.constant 1.280000e+02 : f32
    %96 = vector.broadcast %cst_41 : f32 to vector<2x1xf32>
    %97 = arith.divf %95, %96 : vector<2x1xf32>
    %98 = vector.broadcast %97 : vector<2x1xf32> to vector<2x128xf32>
    %99 = arith.subf %93, %98 : vector<2x128xf32>
    %100 = arith.mulf %99, %99 : vector<2x128xf32>
    %cst_42 = arith.constant dense<0.000000e+00> : vector<2xf32>
    %101 = vector.multi_reduction <add>, %100, %cst_42 [1] : vector<2x128xf32> to vector<2xf32>
    %102 = vector.shape_cast %101 : vector<2xf32> to vector<2x1xf32>
    %cst_43 = arith.constant 1.280000e+02 : f32
    %103 = vector.broadcast %cst_43 : f32 to vector<2x1xf32>
    %104 = arith.divf %102, %103 : vector<2x1xf32>
    %105 = vector.broadcast %97 : vector<2x1xf32> to vector<2x128xf32>
    %106 = arith.subf %93, %105 : vector<2x128xf32>
    %cst_44 = arith.constant 9.99999974E-6 : f32
    %107 = vector.broadcast %cst_44 : f32 to vector<2x1xf32>
    %108 = arith.addf %104, %107 : vector<2x1xf32>
    %109 = math.rsqrt %108 : vector<2x1xf32>
    %110 = vector.broadcast %109 : vector<2x1xf32> to vector<2x128xf32>
    %111 = arith.mulf %106, %110 : vector<2x128xf32>
    %112 = vector.broadcast %89 : vector<1x128xf32> to vector<2x128xf32>
    %113 = arith.mulf %111, %112 : vector<2x128xf32>
    %114 = vector.broadcast %90 : vector<1x128xf32> to vector<2x128xf32>
    %115 = arith.addf %113, %114 : vector<2x128xf32>
    %cst_45 = arith.constant 5.000000e-01 : f32
    %116 = vector.broadcast %cst_45 : f32 to vector<2x128xf32>
    %117 = arith.mulf %116, %115 : vector<2x128xf32>
    %cst_46 = arith.constant 0.707106769 : f32
    %118 = vector.broadcast %cst_46 : f32 to vector<2x128xf32>
    %119 = arith.mulf %115, %118 : vector<2x128xf32>
    %120 = math.absf %119 : vector<2x128xf32>
    %cst_47 = arith.constant 5.000000e-01 : f32
    %121 = vector.broadcast %cst_47 : f32 to vector<2x128xf32>
    %122 = arith.mulf %121, %120 : vector<2x128xf32>
    %cst_48 = arith.constant 1.000000e+00 : f32
    %123 = vector.broadcast %cst_48 : f32 to vector<2x128xf32>
    %124 = arith.addf %123, %122 : vector<2x128xf32>
    %cst_49 = arith.constant 1.000000e+00 : f32
    %125 = vector.broadcast %cst_49 : f32 to vector<2x128xf32>
    %126 = arith.divf %125, %124 : vector<2x128xf32>
    %cst_50 = arith.constant 0.170872763 : f32
    %127 = vector.broadcast %cst_50 : f32 to vector<2x128xf32>
    %128 = arith.mulf %126, %127 : vector<2x128xf32>
    %cst_51 = arith.constant -0.822152256 : f32
    %129 = vector.broadcast %cst_51 : f32 to vector<2x128xf32>
    %130 = arith.addf %129, %128 : vector<2x128xf32>
    %131 = arith.mulf %126, %130 : vector<2x128xf32>
    %cst_52 = arith.constant 1.48851585 : f32
    %132 = vector.broadcast %cst_52 : f32 to vector<2x128xf32>
    %133 = arith.addf %132, %131 : vector<2x128xf32>
    %134 = arith.mulf %126, %133 : vector<2x128xf32>
    %cst_53 = arith.constant -1.13520396 : f32
    %135 = vector.broadcast %cst_53 : f32 to vector<2x128xf32>
    %136 = arith.addf %135, %134 : vector<2x128xf32>
    %137 = arith.mulf %126, %136 : vector<2x128xf32>
    %cst_54 = arith.constant 0.278868079 : f32
    %138 = vector.broadcast %cst_54 : f32 to vector<2x128xf32>
    %139 = arith.addf %138, %137 : vector<2x128xf32>
    %140 = arith.mulf %126, %139 : vector<2x128xf32>
    %cst_55 = arith.constant -0.186288059 : f32
    %141 = vector.broadcast %cst_55 : f32 to vector<2x128xf32>
    %142 = arith.addf %141, %140 : vector<2x128xf32>
    %143 = arith.mulf %126, %142 : vector<2x128xf32>
    %cst_56 = arith.constant 0.0967841818 : f32
    %144 = vector.broadcast %cst_56 : f32 to vector<2x128xf32>
    %145 = arith.addf %144, %143 : vector<2x128xf32>
    %146 = arith.mulf %126, %145 : vector<2x128xf32>
    %cst_57 = arith.constant 0.374091953 : f32
    %147 = vector.broadcast %cst_57 : f32 to vector<2x128xf32>
    %148 = arith.addf %147, %146 : vector<2x128xf32>
    %149 = arith.mulf %126, %148 : vector<2x128xf32>
    %cst_58 = arith.constant 1.00002372 : f32
    %150 = vector.broadcast %cst_58 : f32 to vector<2x128xf32>
    %151 = arith.addf %150, %149 : vector<2x128xf32>
    %152 = arith.mulf %126, %151 : vector<2x128xf32>
    %cst_59 = arith.constant -1.26551223 : f32
    %153 = vector.broadcast %cst_59 : f32 to vector<2x128xf32>
    %154 = arith.addf %153, %152 : vector<2x128xf32>
    %cst_60 = arith.constant 0.000000e+00 : f32
    %155 = vector.broadcast %cst_60 : f32 to vector<2x128xf32>
    %156 = arith.subf %155, %120 : vector<2x128xf32>
    %157 = arith.mulf %156, %120 : vector<2x128xf32>
    %158 = arith.addf %157, %154 : vector<2x128xf32>
    %159 = math.exp %158 : vector<2x128xf32>
    %160 = arith.mulf %126, %159 : vector<2x128xf32>
    %cst_61 = arith.constant 0.000000e+00 : f32
    %161 = vector.broadcast %cst_61 : f32 to vector<2x128xf32>
    %162 = arith.cmpf oge, %119, %161 : vector<2x128xf32>
    %cst_62 = arith.constant 1.000000e+00 : f32
    %163 = vector.broadcast %cst_62 : f32 to vector<2x128xf32>
    %164 = arith.subf %163, %160 : vector<2x128xf32>
    %cst_63 = arith.constant 1.000000e+00 : f32
    %165 = vector.broadcast %cst_63 : f32 to vector<2x128xf32>
    %166 = arith.subf %160, %165 : vector<2x128xf32>
    %167 = arith.select %162, %164, %166 : vector<2x128xi1>, vector<2x128xf32>
    %cst_64 = arith.constant 1.000000e+00 : f32
    %168 = vector.broadcast %cst_64 : f32 to vector<2x128xf32>
    %169 = arith.addf %168, %167 : vector<2x128xf32>
    %170 = arith.mulf %117, %169 : vector<2x128xf32>
    %c6 = arith.constant 6 : index
    %c0_65 = arith.constant 0 : index
    %171 = vector.load %arg4[%c6, %c0_65] : memref<10x256xf32, #tpu.memory_space<vmem>>, vector<1x256xf32>
    %c7 = arith.constant 7 : index
    %c0_66 = arith.constant 0 : index
    %172 = vector.load %arg4[%c7, %c0_66] : memref<10x256xf32, #tpu.memory_space<vmem>>, vector<1x256xf32>
    %c8 = arith.constant 8 : index
    %c0_67 = arith.constant 0 : index
    %173 = vector.load %arg4[%c8, %c0_67] : memref<10x256xf32, #tpu.memory_space<vmem>>, vector<1x256xf32>
    %c0_68 = arith.constant 0 : index
    %c0_69 = arith.constant 0 : index
    %174 = vector.load %arg2[%c0_68, %c0_69] : memref<128x256xf32, #tpu.memory_space<vmem>>, vector<128x256xf32>
    %cst_70 = arith.constant dense<0.000000e+00> : vector<2x256xf32>
    %175 = tpu.matmul %170, %174, %cst_70 {dimension_numbers = #tpu.dot_dimension_numbers<[1], [0], [0], [1], [0, 0, 1, 1], [], []>} : vector<2x128xf32>, vector<128x256xf32>, vector<2x256xf32> -> vector<2x256xf32>
    %176 = vector.broadcast %171 : vector<1x256xf32> to vector<2x256xf32>
    %177 = arith.addf %175, %176 : vector<2x256xf32>
    %178 = tpu.iota {dimensions = array<i32: 1>} : vector<2x256xi32>
    %cst_71 = arith.constant 0.000000e+00 : f32
    %179 = vector.broadcast %cst_71 : f32 to vector<2x256xf32>
    %c0_i32 = arith.constant 0 : i32
    %180 = vector.broadcast %c0_i32 : i32 to vector<2x256xi32>
    %181 = arith.cmpi sge, %178, %180 : vector<2x256xi32>
    %c64_i32 = arith.constant 64 : i32
    %182 = vector.broadcast %c64_i32 : i32 to vector<2x256xi32>
    %183 = arith.cmpi slt, %178, %182 : vector<2x256xi32>
    %184 = arith.andi %181, %183 : vector<2x256xi1>
    %cst_72 = arith.constant 0.000000e+00 : f32
    %185 = vector.broadcast %cst_72 : f32 to vector<2x256xf32>
    %186 = arith.select %184, %177, %185 : vector<2x256xi1>, vector<2x256xf32>
    %cst_73 = arith.constant dense<0.000000e+00> : vector<2xf32>
    %187 = vector.multi_reduction <add>, %186, %cst_73 [1] : vector<2x256xf32> to vector<2xf32>
    %188 = vector.shape_cast %187 : vector<2xf32> to vector<2x1xf32>
    %cst_74 = arith.constant 1.562500e-02 : f32
    %189 = vector.broadcast %cst_74 : f32 to vector<2x1xf32>
    %190 = arith.mulf %188, %189 : vector<2x1xf32>
    %191 = vector.shape_cast %190 : vector<2x1xf32> to vector<2x1xf32>
    %192 = vector.broadcast %191 : vector<2x1xf32> to vector<2x256xf32>
    %193 = arith.select %184, %192, %179 : vector<2x256xi1>, vector<2x256xf32>
    %c64_i32_75 = arith.constant 64 : i32
    %194 = vector.broadcast %c64_i32_75 : i32 to vector<2x256xi32>
    %195 = arith.cmpi sge, %178, %194 : vector<2x256xi32>
    %c128_i32 = arith.constant 128 : i32
    %196 = vector.broadcast %c128_i32 : i32 to vector<2x256xi32>
    %197 = arith.cmpi slt, %178, %196 : vector<2x256xi32>
    %198 = arith.andi %195, %197 : vector<2x256xi1>
    %cst_76 = arith.constant 0.000000e+00 : f32
    %199 = vector.broadcast %cst_76 : f32 to vector<2x256xf32>
    %200 = arith.select %198, %177, %199 : vector<2x256xi1>, vector<2x256xf32>
    %cst_77 = arith.constant dense<0.000000e+00> : vector<2xf32>
    %201 = vector.multi_reduction <add>, %200, %cst_77 [1] : vector<2x256xf32> to vector<2xf32>
    %202 = vector.shape_cast %201 : vector<2xf32> to vector<2x1xf32>
    %cst_78 = arith.constant 1.562500e-02 : f32
    %203 = vector.broadcast %cst_78 : f32 to vector<2x1xf32>
    %204 = arith.mulf %202, %203 : vector<2x1xf32>
    %205 = vector.shape_cast %204 : vector<2x1xf32> to vector<2x1xf32>
    %206 = vector.broadcast %205 : vector<2x1xf32> to vector<2x256xf32>
    %207 = arith.select %198, %206, %193 : vector<2x256xi1>, vector<2x256xf32>
    %c128_i32_79 = arith.constant 128 : i32
    %208 = vector.broadcast %c128_i32_79 : i32 to vector<2x256xi32>
    %209 = arith.cmpi sge, %178, %208 : vector<2x256xi32>
    %c192_i32 = arith.constant 192 : i32
    %210 = vector.broadcast %c192_i32 : i32 to vector<2x256xi32>
    %211 = arith.cmpi slt, %178, %210 : vector<2x256xi32>
    %212 = arith.andi %209, %211 : vector<2x256xi1>
    %cst_80 = arith.constant 0.000000e+00 : f32
    %213 = vector.broadcast %cst_80 : f32 to vector<2x256xf32>
    %214 = arith.select %212, %177, %213 : vector<2x256xi1>, vector<2x256xf32>
    %cst_81 = arith.constant dense<0.000000e+00> : vector<2xf32>
    %215 = vector.multi_reduction <add>, %214, %cst_81 [1] : vector<2x256xf32> to vector<2xf32>
    %216 = vector.shape_cast %215 : vector<2xf32> to vector<2x1xf32>
    %cst_82 = arith.constant 1.562500e-02 : f32
    %217 = vector.broadcast %cst_82 : f32 to vector<2x1xf32>
    %218 = arith.mulf %216, %217 : vector<2x1xf32>
    %219 = vector.shape_cast %218 : vector<2x1xf32> to vector<2x1xf32>
    %220 = vector.broadcast %219 : vector<2x1xf32> to vector<2x256xf32>
    %221 = arith.select %212, %220, %207 : vector<2x256xi1>, vector<2x256xf32>
    %c192_i32_83 = arith.constant 192 : i32
    %222 = vector.broadcast %c192_i32_83 : i32 to vector<2x256xi32>
    %223 = arith.cmpi sge, %178, %222 : vector<2x256xi32>
    %c256_i32 = arith.constant 256 : i32
    %224 = vector.broadcast %c256_i32 : i32 to vector<2x256xi32>
    %225 = arith.cmpi slt, %178, %224 : vector<2x256xi32>
    %226 = arith.andi %223, %225 : vector<2x256xi1>
    %cst_84 = arith.constant 0.000000e+00 : f32
    %227 = vector.broadcast %cst_84 : f32 to vector<2x256xf32>
    %228 = arith.select %226, %177, %227 : vector<2x256xi1>, vector<2x256xf32>
    %cst_85 = arith.constant dense<0.000000e+00> : vector<2xf32>
    %229 = vector.multi_reduction <add>, %228, %cst_85 [1] : vector<2x256xf32> to vector<2xf32>
    %230 = vector.shape_cast %229 : vector<2xf32> to vector<2x1xf32>
    %cst_86 = arith.constant 1.562500e-02 : f32
    %231 = vector.broadcast %cst_86 : f32 to vector<2x1xf32>
    %232 = arith.mulf %230, %231 : vector<2x1xf32>
    %233 = vector.shape_cast %232 : vector<2x1xf32> to vector<2x1xf32>
    %234 = vector.broadcast %233 : vector<2x1xf32> to vector<2x256xf32>
    %235 = arith.select %226, %234, %221 : vector<2x256xi1>, vector<2x256xf32>
    %236 = arith.subf %177, %235 : vector<2x256xf32>
    %cst_87 = arith.constant 0.000000e+00 : f32
    %237 = vector.broadcast %cst_87 : f32 to vector<2x256xf32>
    %c0_i32_88 = arith.constant 0 : i32
    %238 = vector.broadcast %c0_i32_88 : i32 to vector<2x256xi32>
    %239 = arith.cmpi sge, %178, %238 : vector<2x256xi32>
    %c64_i32_89 = arith.constant 64 : i32
    %240 = vector.broadcast %c64_i32_89 : i32 to vector<2x256xi32>
    %241 = arith.cmpi slt, %178, %240 : vector<2x256xi32>
    %242 = arith.andi %239, %241 : vector<2x256xi1>
    %243 = arith.mulf %236, %236 : vector<2x256xf32>
    %cst_90 = arith.constant 0.000000e+00 : f32
    %244 = vector.broadcast %cst_90 : f32 to vector<2x256xf32>
    %245 = arith.select %242, %243, %244 : vector<2x256xi1>, vector<2x256xf32>
    %cst_91 = arith.constant dense<0.000000e+00> : vector<2xf32>
    %246 = vector.multi_reduction <add>, %245, %cst_91 [1] : vector<2x256xf32> to vector<2xf32>
    %247 = vector.shape_cast %246 : vector<2xf32> to vector<2x1xf32>
    %cst_92 = arith.constant 1.562500e-02 : f32
    %248 = vector.broadcast %cst_92 : f32 to vector<2x1xf32>
    %249 = arith.mulf %247, %248 : vector<2x1xf32>
    %250 = vector.shape_cast %249 : vector<2x1xf32> to vector<2x1xf32>
    %251 = vector.broadcast %250 : vector<2x1xf32> to vector<2x256xf32>
    %252 = arith.select %242, %251, %237 : vector<2x256xi1>, vector<2x256xf32>
    %c64_i32_93 = arith.constant 64 : i32
    %253 = vector.broadcast %c64_i32_93 : i32 to vector<2x256xi32>
    %254 = arith.cmpi sge, %178, %253 : vector<2x256xi32>
    %c128_i32_94 = arith.constant 128 : i32
    %255 = vector.broadcast %c128_i32_94 : i32 to vector<2x256xi32>
    %256 = arith.cmpi slt, %178, %255 : vector<2x256xi32>
    %257 = arith.andi %254, %256 : vector<2x256xi1>
    %258 = arith.mulf %236, %236 : vector<2x256xf32>
    %cst_95 = arith.constant 0.000000e+00 : f32
    %259 = vector.broadcast %cst_95 : f32 to vector<2x256xf32>
    %260 = arith.select %257, %258, %259 : vector<2x256xi1>, vector<2x256xf32>
    %cst_96 = arith.constant dense<0.000000e+00> : vector<2xf32>
    %261 = vector.multi_reduction <add>, %260, %cst_96 [1] : vector<2x256xf32> to vector<2xf32>
    %262 = vector.shape_cast %261 : vector<2xf32> to vector<2x1xf32>
    %cst_97 = arith.constant 1.562500e-02 : f32
    %263 = vector.broadcast %cst_97 : f32 to vector<2x1xf32>
    %264 = arith.mulf %262, %263 : vector<2x1xf32>
    %265 = vector.shape_cast %264 : vector<2x1xf32> to vector<2x1xf32>
    %266 = vector.broadcast %265 : vector<2x1xf32> to vector<2x256xf32>
    %267 = arith.select %257, %266, %252 : vector<2x256xi1>, vector<2x256xf32>
    %c128_i32_98 = arith.constant 128 : i32
    %268 = vector.broadcast %c128_i32_98 : i32 to vector<2x256xi32>
    %269 = arith.cmpi sge, %178, %268 : vector<2x256xi32>
    %c192_i32_99 = arith.constant 192 : i32
    %270 = vector.broadcast %c192_i32_99 : i32 to vector<2x256xi32>
    %271 = arith.cmpi slt, %178, %270 : vector<2x256xi32>
    %272 = arith.andi %269, %271 : vector<2x256xi1>
    %273 = arith.mulf %236, %236 : vector<2x256xf32>
    %cst_100 = arith.constant 0.000000e+00 : f32
    %274 = vector.broadcast %cst_100 : f32 to vector<2x256xf32>
    %275 = arith.select %272, %273, %274 : vector<2x256xi1>, vector<2x256xf32>
    %cst_101 = arith.constant dense<0.000000e+00> : vector<2xf32>
    %276 = vector.multi_reduction <add>, %275, %cst_101 [1] : vector<2x256xf32> to vector<2xf32>
    %277 = vector.shape_cast %276 : vector<2xf32> to vector<2x1xf32>
    %cst_102 = arith.constant 1.562500e-02 : f32
    %278 = vector.broadcast %cst_102 : f32 to vector<2x1xf32>
    %279 = arith.mulf %277, %278 : vector<2x1xf32>
    %280 = vector.shape_cast %279 : vector<2x1xf32> to vector<2x1xf32>
    %281 = vector.broadcast %280 : vector<2x1xf32> to vector<2x256xf32>
    %282 = arith.select %272, %281, %267 : vector<2x256xi1>, vector<2x256xf32>
    %c192_i32_103 = arith.constant 192 : i32
    %283 = vector.broadcast %c192_i32_103 : i32 to vector<2x256xi32>
    %284 = arith.cmpi sge, %178, %283 : vector<2x256xi32>
    %c256_i32_104 = arith.constant 256 : i32
    %285 = vector.broadcast %c256_i32_104 : i32 to vector<2x256xi32>
    %286 = arith.cmpi slt, %178, %285 : vector<2x256xi32>
    %287 = arith.andi %284, %286 : vector<2x256xi1>
    %288 = arith.mulf %236, %236 : vector<2x256xf32>
    %cst_105 = arith.constant 0.000000e+00 : f32
    %289 = vector.broadcast %cst_105 : f32 to vector<2x256xf32>
    %290 = arith.select %287, %288, %289 : vector<2x256xi1>, vector<2x256xf32>
    %cst_106 = arith.constant dense<0.000000e+00> : vector<2xf32>
    %291 = vector.multi_reduction <add>, %290, %cst_106 [1] : vector<2x256xf32> to vector<2xf32>
    %292 = vector.shape_cast %291 : vector<2xf32> to vector<2x1xf32>
    %cst_107 = arith.constant 1.562500e-02 : f32
    %293 = vector.broadcast %cst_107 : f32 to vector<2x1xf32>
    %294 = arith.mulf %292, %293 : vector<2x1xf32>
    %295 = vector.shape_cast %294 : vector<2x1xf32> to vector<2x1xf32>
    %296 = vector.broadcast %295 : vector<2x1xf32> to vector<2x256xf32>
    %297 = arith.select %287, %296, %282 : vector<2x256xi1>, vector<2x256xf32>
    %cst_108 = arith.constant 9.99999974E-6 : f32
    %298 = vector.broadcast %cst_108 : f32 to vector<2x256xf32>
    %299 = arith.addf %297, %298 : vector<2x256xf32>
    %300 = math.rsqrt %299 : vector<2x256xf32>
    %301 = arith.mulf %236, %300 : vector<2x256xf32>
    %302 = vector.broadcast %172 : vector<1x256xf32> to vector<2x256xf32>
    %303 = arith.mulf %301, %302 : vector<2x256xf32>
    %304 = vector.broadcast %173 : vector<1x256xf32> to vector<2x256xf32>
    %305 = arith.addf %303, %304 : vector<2x256xf32>
    %cst_109 = arith.constant 5.000000e-01 : f32
    %306 = vector.broadcast %cst_109 : f32 to vector<2x256xf32>
    %307 = arith.mulf %306, %305 : vector<2x256xf32>
    %cst_110 = arith.constant 0.707106769 : f32
    %308 = vector.broadcast %cst_110 : f32 to vector<2x256xf32>
    %309 = arith.mulf %305, %308 : vector<2x256xf32>
    %310 = math.absf %309 : vector<2x256xf32>
    %cst_111 = arith.constant 5.000000e-01 : f32
    %311 = vector.broadcast %cst_111 : f32 to vector<2x256xf32>
    %312 = arith.mulf %311, %310 : vector<2x256xf32>
    %cst_112 = arith.constant 1.000000e+00 : f32
    %313 = vector.broadcast %cst_112 : f32 to vector<2x256xf32>
    %314 = arith.addf %313, %312 : vector<2x256xf32>
    %cst_113 = arith.constant 1.000000e+00 : f32
    %315 = vector.broadcast %cst_113 : f32 to vector<2x256xf32>
    %316 = arith.divf %315, %314 : vector<2x256xf32>
    %cst_114 = arith.constant 0.170872763 : f32
    %317 = vector.broadcast %cst_114 : f32 to vector<2x256xf32>
    %318 = arith.mulf %316, %317 : vector<2x256xf32>
    %cst_115 = arith.constant -0.822152256 : f32
    %319 = vector.broadcast %cst_115 : f32 to vector<2x256xf32>
    %320 = arith.addf %319, %318 : vector<2x256xf32>
    %321 = arith.mulf %316, %320 : vector<2x256xf32>
    %cst_116 = arith.constant 1.48851585 : f32
    %322 = vector.broadcast %cst_116 : f32 to vector<2x256xf32>
    %323 = arith.addf %322, %321 : vector<2x256xf32>
    %324 = arith.mulf %316, %323 : vector<2x256xf32>
    %cst_117 = arith.constant -1.13520396 : f32
    %325 = vector.broadcast %cst_117 : f32 to vector<2x256xf32>
    %326 = arith.addf %325, %324 : vector<2x256xf32>
    %327 = arith.mulf %316, %326 : vector<2x256xf32>
    %cst_118 = arith.constant 0.278868079 : f32
    %328 = vector.broadcast %cst_118 : f32 to vector<2x256xf32>
    %329 = arith.addf %328, %327 : vector<2x256xf32>
    %330 = arith.mulf %316, %329 : vector<2x256xf32>
    %cst_119 = arith.constant -0.186288059 : f32
    %331 = vector.broadcast %cst_119 : f32 to vector<2x256xf32>
    %332 = arith.addf %331, %330 : vector<2x256xf32>
    %333 = arith.mulf %316, %332 : vector<2x256xf32>
    %cst_120 = arith.constant 0.0967841818 : f32
    %334 = vector.broadcast %cst_120 : f32 to vector<2x256xf32>
    %335 = arith.addf %334, %333 : vector<2x256xf32>
    %336 = arith.mulf %316, %335 : vector<2x256xf32>
    %cst_121 = arith.constant 0.374091953 : f32
    %337 = vector.broadcast %cst_121 : f32 to vector<2x256xf32>
    %338 = arith.addf %337, %336 : vector<2x256xf32>
    %339 = arith.mulf %316, %338 : vector<2x256xf32>
    %cst_122 = arith.constant 1.00002372 : f32
    %340 = vector.broadcast %cst_122 : f32 to vector<2x256xf32>
    %341 = arith.addf %340, %339 : vector<2x256xf32>
    %342 = arith.mulf %316, %341 : vector<2x256xf32>
    %cst_123 = arith.constant -1.26551223 : f32
    %343 = vector.broadcast %cst_123 : f32 to vector<2x256xf32>
    %344 = arith.addf %343, %342 : vector<2x256xf32>
    %cst_124 = arith.constant 0.000000e+00 : f32
    %345 = vector.broadcast %cst_124 : f32 to vector<2x256xf32>
    %346 = arith.subf %345, %310 : vector<2x256xf32>
    %347 = arith.mulf %346, %310 : vector<2x256xf32>
    %348 = arith.addf %347, %344 : vector<2x256xf32>
    %349 = math.exp %348 : vector<2x256xf32>
    %350 = arith.mulf %316, %349 : vector<2x256xf32>
    %cst_125 = arith.constant 0.000000e+00 : f32
    %351 = vector.broadcast %cst_125 : f32 to vector<2x256xf32>
    %352 = arith.cmpf oge, %309, %351 : vector<2x256xf32>
    %cst_126 = arith.constant 1.000000e+00 : f32
    %353 = vector.broadcast %cst_126 : f32 to vector<2x256xf32>
    %354 = arith.subf %353, %350 : vector<2x256xf32>
    %cst_127 = arith.constant 1.000000e+00 : f32
    %355 = vector.broadcast %cst_127 : f32 to vector<2x256xf32>
    %356 = arith.subf %350, %355 : vector<2x256xf32>
    %357 = arith.select %352, %354, %356 : vector<2x256xi1>, vector<2x256xf32>
    %cst_128 = arith.constant 1.000000e+00 : f32
    %358 = vector.broadcast %cst_128 : f32 to vector<2x256xf32>
    %359 = arith.addf %358, %357 : vector<2x256xf32>
    %360 = arith.mulf %307, %359 : vector<2x256xf32>
    %c9 = arith.constant 9 : index
    %c0_129 = arith.constant 0 : index
    %361 = vector.load %arg4[%c9, %c0_129] : memref<10x256xf32, #tpu.memory_space<vmem>>, vector<1x16xf32>
    %c0_130 = arith.constant 0 : index
    %c0_131 = arith.constant 0 : index
    %362 = vector.load %arg3[%c0_130, %c0_131] : memref<256x16xf32, #tpu.memory_space<vmem>>, vector<256x16xf32>
    %cst_132 = arith.constant dense<0.000000e+00> : vector<2x16xf32>
    %363 = tpu.matmul %360, %362, %cst_132 {dimension_numbers = #tpu.dot_dimension_numbers<[1], [0], [0], [1], [0, 0, 1, 1], [], []>} : vector<2x256xf32>, vector<256x16xf32>, vector<2x16xf32> -> vector<2x16xf32>
    %364 = vector.broadcast %361 : vector<1x16xf32> to vector<2x16xf32>
    %365 = arith.addf %363, %364 : vector<2x16xf32>
    %366 = tpu.iota {dimensions = array<i32: 1>} : vector<2x16xi32>
    %cst_133 = arith.constant 0.000000e+00 : f32
    %367 = vector.broadcast %cst_133 : f32 to vector<2x16xf32>
    %368 = arith.subf %367, %365 : vector<2x16xf32>
    %369 = math.exp %368 : vector<2x16xf32>
    %cst_134 = arith.constant 1.000000e+00 : f32
    %370 = vector.broadcast %cst_134 : f32 to vector<2x16xf32>
    %371 = arith.addf %370, %369 : vector<2x16xf32>
    %cst_135 = arith.constant 1.000000e+00 : f32
    %372 = vector.broadcast %cst_135 : f32 to vector<2x16xf32>
    %373 = arith.divf %372, %371 : vector<2x16xf32>
    %c0_i32_136 = arith.constant 0 : i32
    %374 = vector.broadcast %c0_i32_136 : i32 to vector<2x16xi32>
    %375 = arith.cmpi eq, %366, %374 : vector<2x16xi32>
    %c1_i32 = arith.constant 1 : i32
    %376 = vector.broadcast %c1_i32 : i32 to vector<2x16xi32>
    %377 = arith.cmpi eq, %366, %376 : vector<2x16xi32>
    %cst_137 = arith.constant 8.000000e+01 : f32
    %cst_138 = arith.constant 9.000000e+01 : f32
    %378 = vector.broadcast %cst_137 : f32 to vector<2x16xf32>
    %379 = vector.broadcast %cst_138 : f32 to vector<2x16xf32>
    %380 = arith.select %377, %378, %379 : vector<2x16xi1>, vector<2x16xf32>
    %cst_139 = arith.constant 1.000000e+02 : f32
    %381 = vector.broadcast %cst_139 : f32 to vector<2x16xf32>
    %382 = arith.select %375, %381, %380 : vector<2x16xi1>, vector<2x16xf32>
    %c0_i32_140 = arith.constant 0 : i32
    %383 = vector.broadcast %c0_i32_140 : i32 to vector<2x16xi32>
    %384 = arith.cmpi eq, %366, %383 : vector<2x16xi32>
    %c1_i32_141 = arith.constant 1 : i32
    %385 = vector.broadcast %c1_i32_141 : i32 to vector<2x16xi32>
    %386 = arith.cmpi eq, %366, %385 : vector<2x16xi32>
    %cst_142 = arith.constant 2.000000e+01 : f32
    %cst_143 = arith.constant 1.000000e+01 : f32
    %387 = vector.broadcast %cst_142 : f32 to vector<2x16xf32>
    %388 = vector.broadcast %cst_143 : f32 to vector<2x16xf32>
    %389 = arith.select %386, %387, %388 : vector<2x16xi1>, vector<2x16xf32>
    %cst_144 = arith.constant 0.000000e+00 : f32
    %390 = vector.broadcast %cst_144 : f32 to vector<2x16xf32>
    %391 = arith.select %384, %390, %389 : vector<2x16xi1>, vector<2x16xf32>
    %392 = arith.mulf %373, %382 : vector<2x16xf32>
    %393 = arith.addf %392, %391 : vector<2x16xf32>
    %c3_i32 = arith.constant 3 : i32
    %394 = vector.broadcast %c3_i32 : i32 to vector<2x16xi32>
    %395 = arith.cmpi sge, %366, %394 : vector<2x16xi32>
    %c8_i32 = arith.constant 8 : i32
    %396 = vector.broadcast %c8_i32 : i32 to vector<2x16xi32>
    %397 = arith.cmpi slt, %366, %396 : vector<2x16xi32>
    %398 = arith.andi %395, %397 : vector<2x16xi1>
    %cst_145 = arith.constant -1.000000e+30 : f32
    %399 = vector.broadcast %cst_145 : f32 to vector<2x16xf32>
    %400 = arith.select %398, %365, %399 : vector<2x16xi1>, vector<2x16xf32>
    %cst_146 = arith.constant dense<0xFF800000> : vector<2xf32>
    %401 = vector.multi_reduction <maximumf>, %400, %cst_146 [1] : vector<2x16xf32> to vector<2xf32>
    %402 = vector.shape_cast %401 : vector<2xf32> to vector<2x1xf32>
    %403 = vector.broadcast %402 : vector<2x1xf32> to vector<2x16xf32>
    %404 = arith.subf %365, %403 : vector<2x16xf32>
    %405 = math.exp %404 : vector<2x16xf32>
    %cst_147 = arith.constant 0.000000e+00 : f32
    %406 = vector.broadcast %cst_147 : f32 to vector<2x16xf32>
    %407 = arith.select %398, %405, %406 : vector<2x16xi1>, vector<2x16xf32>
    %cst_148 = arith.constant dense<0.000000e+00> : vector<2xf32>
    %408 = vector.multi_reduction <add>, %407, %cst_148 [1] : vector<2x16xf32> to vector<2xf32>
    %409 = vector.shape_cast %408 : vector<2xf32> to vector<2x1xf32>
    %410 = vector.broadcast %409 : vector<2x1xf32> to vector<2x16xf32>
    %411 = arith.divf %407, %410 : vector<2x16xf32>
    %c3_i32_149 = arith.constant 3 : i32
    %412 = vector.broadcast %c3_i32_149 : i32 to vector<2x16xi32>
    %413 = arith.subi %366, %412 : vector<2x16xi32>
    %414 = arith.sitofp %413 : vector<2x16xi32> to vector<2x16xf32>
    %415 = vector.broadcast %402 : vector<2x1xf32> to vector<2x16xf32>
    %416 = arith.cmpf oge, %365, %415 : vector<2x16xf32>
    %417 = arith.andi %398, %416 : vector<2x16xi1>
    %cst_150 = arith.constant 1.000000e+09 : f32
    %418 = vector.broadcast %cst_150 : f32 to vector<2x16xf32>
    %419 = arith.select %417, %414, %418 : vector<2x16xi1>, vector<2x16xf32>
    %cst_151 = arith.constant dense<0x7F800000> : vector<2xf32>
    %420 = vector.multi_reduction <minimumf>, %419, %cst_151 [1] : vector<2x16xf32> to vector<2xf32>
    %421 = vector.shape_cast %420 : vector<2xf32> to vector<2x1xf32>
    %c3_i32_152 = arith.constant 3 : i32
    %422 = vector.broadcast %c3_i32_152 : i32 to vector<2x16xi32>
    %423 = arith.cmpi slt, %366, %422 : vector<2x16xi32>
    %c8_i32_153 = arith.constant 8 : i32
    %424 = vector.broadcast %c8_i32_153 : i32 to vector<2x16xi32>
    %425 = arith.cmpi slt, %366, %424 : vector<2x16xi32>
    %c8_i32_154 = arith.constant 8 : i32
    %426 = vector.broadcast %c8_i32_154 : i32 to vector<2x16xi32>
    %427 = arith.cmpi eq, %366, %426 : vector<2x16xi32>
    %cst_155 = arith.constant 0.000000e+00 : f32
    %428 = vector.shape_cast %421 : vector<2x1xf32> to vector<2x1xf32>
    %429 = vector.broadcast %428 : vector<2x1xf32> to vector<2x16xf32>
    %430 = vector.broadcast %cst_155 : f32 to vector<2x16xf32>
    %431 = arith.select %427, %429, %430 : vector<2x16xi1>, vector<2x16xf32>
    %432 = arith.select %425, %411, %431 : vector<2x16xi1>, vector<2x16xf32>
    %433 = arith.select %423, %393, %432 : vector<2x16xi1>, vector<2x16xf32>
    %c0_156 = arith.constant 0 : index
    %c0_157 = arith.constant 0 : index
    %434 = vector.load %arg5[%c0_156, %c0_157] : memref<2x16xf32, #tpu.memory_space<vmem>>, vector<2x16xf32>
    tpu.vector_store %arg5[%c0_156, %c0_157], %433 {strides = array<i32>} : memref<2x16xf32, #tpu.memory_space<vmem>>, vector<2x16xf32>,
    return
  }
}

</mosaic_0001>

<bundles_post_ra>
// kernel: static_parameter_decoder_forward.1
= control target key start
LH: loop header
LB: loop body
LE: loop exit
PB: predicated region body
PF: predicated region fallthrough
CT: control target
= control target key end

     0   :  { %10 = vsyncpa [#allocation3], 0  ;;  %s1149_s18 = smov [#allocation2]   ;;  %s1562_s0 = inlined_call_operand.vmem [shape: f32[2,128], index: 0, kind: input, shape index: {}]   ;;  %s1563_s1 = inlined_call_operand.vmem [shape: f32[2,128,128], index: 1, kind: input, shape index: {}]   ;;  %s1564_s2 = inlined_call_operand.hbm [shape: f32[128,256], index: 2, kind: input, shape index: {}]   ;;  %s1565_s3 = inlined_call_operand.vmem [shape: f32[256,16], index: 3, kind: input, shape index: {}]   ;;  %s1566_s4 = inlined_call_operand.vmem [shape: f32[10,256], index: 4, kind: input, shape index: {}]   ;;  %s1567_s5 = inlined_call_operand.vmem [shape: f32[2,16], index: 5, kind: output, shape index: {}]  }
   0x1   :  { %s20_s19 = sshll.u32 %s1149_s18, 4  ;;  %s1125_s22 = scalar_lea.hbm %s1564_s2, 4096  ;;  %s21_s19 = int_to_ptr.vmem [resolvable:$true] %s20_s19 }
   0x2   :  { %p1126_p0 = scmp.ne.s32.totalorder %s1564_s2, %s1125_s22  ;;  %p1129_p1 = scmp.lt.u32.totalorder %s1125_s22, %s1564_s2 }
   0x4   :  { %p1131_p2 = pnand %p1129_p1, %p1126_p0 }
   0x6   :  { %1134 = shalt.err (!%p1131_p2)
}
   0x7   :  { %s1135_s27 = scalar_lea.vmem %s21_s19, 4096  ;;  %p1140_p4 = scmp.lt.s32.totalorder %s21_s19, %s21_s19 }
   0x8   :  { %p1136_p3 = scmp.ne.s32.totalorder %s21_s19, %s1135_s27  ;;  %p1141_p5 = scmp.lt.s32.totalorder %s1135_s27, %s1135_s27 }
   0xa   :  { %p1142_p6 = por %p1141_p5, %p1140_p4 }
   0xc   :  { %p1143_p7 = pnand %p1142_p6, %p1136_p3 }
   0xe   :  { %1146 = shalt.err (!%p1143_p7)
}
   0xf   :  { %s1150_s28 = smov 256   ;;  %s1151_s29 = smov 16  }
  0x10   :  { %26 = dma.hbm_to_vmem [thread:$0]  %s1564_s2, 4096, %s21_s19, [#allocation3], %s1150_s28, %s1150_s28, %s1151_s29  }
  0x11   :  { %1147 = dma.done.wait [#allocation3], 4096  }
  0x12   :  { %1148 = vsyncadd [#allocation3], 4294963200  ;;  %v1152_v0 = vmov 0.0|0.0   ;;  %vm1153_vm0 = vmmov 0   ;;  %v1154_v1 = vmov 0.0   ;;  %v35_v2 = vld [vmem:[%s1563_s1] sm:$0xff] }
  0x13   :  { %973 = vmatprep.subr.bf16.mxu0 %v1152_v0  ;;  %935 = vmatprep.mubr.msk.f32.mxu0 %vm1153_vm0, %v1154_v1  ;;  %v36_v3 = vld [vmem:[%s1563_s1 + $0x8] sm:$0xff]  ;;  %v37_v4 = vld [vmem:[%s1563_s1 + $0x10] sm:$0xff]  ;;  %v38_v6 = vld [vmem:[%s1563_s1 + $0x18] sm:$0xff]  ;;  %vm124_vm1 = vcmask 1041408   ;;  %vm778_vm13 = vcmask 123904  }
  0x14   :  { %997 = vmatprep.subr.bf16.mxu1 %v1152_v0  ;;  %970 = vmatprep.mubr.msk.f32.mxu1 %vm1153_vm0, %v1154_v1  ;;  %v974_v5 = vpack.c.bf16 %v36_v3, %v35_v2  ;;  %v977_v7 = vpack.c.bf16 %v38_v6, %v37_v4  ;;  %v39_v8 = vld [vmem:[%s1563_s1 + $0x20] sm:$0xff]  ;;  %v40_v9 = vld [vmem:[%s1563_s1 + $0x28] sm:$0xff]  ;;  %v41_v11 = vld [vmem:[%s1563_s1 + $0x30] sm:$0xff] }
  0x15   :  { %v980_v10 = vpack.c.bf16 %v40_v9, %v39_v8  ;;  %v42_v12 = vld [vmem:[%s1563_s1 + $0x38] sm:$0xff]  ;;  %v43_v14 = vld [vmem:[%s1563_s1 + $0x40] sm:$0xff]  ;;  %v44_v15 = vld [vmem:[%s1563_s1 + $0x48] sm:$0xff] }
  0x16   :  { %975 = vmatpush3.bf16.msra.mxu0 %v974_v5  ;;  %v983_v13 = vpack.c.bf16 %v42_v12, %v41_v11  ;;  %v986_v16 = vpack.c.bf16 %v44_v15, %v43_v14  ;;  %v45_v17 = vld [vmem:[%s1563_s1 + $0x50] sm:$0xff]  ;;  %v46_v18 = vld [vmem:[%s1563_s1 + $0x58] sm:$0xff]  ;;  %v47_v20 = vld [vmem:[%s1563_s1 + $0x60] sm:$0xff] }
  0x17   :  { %976 = vmatprep.subr.bf16.mxu0 %v1152_v0  ;;  %v989_v19 = vpack.c.bf16 %v46_v18, %v45_v17  ;;  %v48_v21 = vld [vmem:[%s1563_s1 + $0x68] sm:$0xff]  ;;  %v49_v23 = vld [vmem:[%s1563_s1 + $0x70] sm:$0xff]  ;;  %v50_v24 = vld [vmem:[%s1563_s1 + $0x78] sm:$0xff] }
  0x18   :  { %v992_v22 = vpack.c.bf16 %v48_v21, %v47_v20  ;;  %v995_v25 = vpack.c.bf16 %v50_v24, %v49_v23  ;;  %v34_v26 = vld [vmem:[%s1562_s0] sm:$0x3]  ;;  %v812_v38 = vld [vmem:[%s1563_s1 + $0x88] sm:$0xff]  ;;  %v813_v39 = vld [vmem:[%s1563_s1 + $0x90] sm:$0xff] }
  0x19   :  { %v51_v27 = vld [vmem:[%s1566_s4] ss:$0 sm:$0xff]  ;;  %v814_v41 = vld [vmem:[%s1563_s1 + $0x98] sm:$0xff]  ;;  %v816_v44 = vld [vmem:[%s1563_s1 + $0xa8] sm:$0xff] }
  0x1a   :  { %978 = vmatpush3.bf16.msra.mxu0 %v977_v7  ;;  %v811_v37 = vld [vmem:[%s1563_s1 + $0x80] sm:$0xff]  ;;  %v1001_v42 = vpack.c.bf16 %v814_v41, %v813_v39  ;;  %v817_v46 = vld [vmem:[%s1563_s1 + $0xb0] sm:$0xff]  ;;  %v818_v47 = vld [vmem:[%s1563_s1 + $0xb8] sm:$0xff] }
  0x1b   :  { %979 = vmatprep.subr.bf16.mxu0 %v1152_v0  ;;  %v998_v40 = vpack.c.bf16 %v812_v38, %v811_v37  ;;  %v815_v43 = vld [vmem:[%s1563_s1 + $0xa0] sm:$0xff]  ;;  %v1007_v48 = vpack.c.bf16 %v818_v47, %v817_v46  ;;  %v820_v50 = vld [vmem:[%s1563_s1 + $0xc8] sm:$0xff]  ;;  %v821_v52 = vld [vmem:[%s1563_s1 + $0xd0] sm:$0xff] }
  0x1c   :  { %v1004_v45 = vpack.c.bf16 %v816_v44, %v815_v43  ;;  %v819_v49 = vld [vmem:[%s1563_s1 + $0xc0] sm:$0xff]  ;;  %v822_v53 = vld [vmem:[%s1563_s1 + $0xd8] sm:$0xff]  ;;  %v824_v56 = vld [vmem:[%s1563_s1 + $0xe8] sm:$0xff] }
  0x1d   :  { %999 = vmatpush3.bf16.msra.mxu1 %v998_v40  ;;  %v1010_v51 = vpack.c.bf16 %v820_v50, %v819_v49  ;;  %v1013_v54 = vpack.c.bf16 %v822_v53, %v821_v52  ;;  %v823_v55 = vld [vmem:[%s1563_s1 + $0xe0] sm:$0xff]  ;;  %v825_v58 = vld [vmem:[%s1563_s1 + $0xf0] sm:$0xff]  ;;  %v826_v59 = vld [vmem:[%s1563_s1 + $0xf8] sm:$0xff] }
  0x1e   :  { %981 = vmatpush3.bf16.msra.mxu0 %v980_v10  ;;  %1000 = vmatprep.subr.bf16.mxu1 %v1152_v0  ;;  %v1016_v57 = vpack.c.bf16 %v824_v56, %v823_v55  ;;  %v1019_v60 = vpack.c.bf16 %v826_v59, %v825_v58  ;;  %v52_v2 = vld [vmem:[%s1566_s4 + $0x1] ss:$0 sm:$0xff]  ;;  %v53_v4 = vld [vmem:[%s1566_s4 + $0x2] ss:$0 sm:$0xff]  ;;  %v195_v41 = vld [vmem:[%s1566_s4 + $0x3] ss:$0 sm:$0xff] }
  0x1f   :  { %982 = vmatprep.subr.bf16.mxu0 %v1152_v0  ;;  %v329_v52 = vld [vmem:[#allocation2 + $0x18] sm:$0xff]  ;;  %v326_v53 = vld [vmem:[#allocation2] sm:$0xff]  ;;  %v328_v55 = vld [vmem:[#allocation2 + $0x10] sm:$0xff] }
  0x20   :  { %v331_v56 = vld [vmem:[#allocation2 + $0x28] sm:$0xff]  ;;  %v1023_v58 = vpack.c.bf16 %v328_v55, %v326_v53 }
  0x21   :  { %1002 = vmatpush3.bf16.msra.mxu1 %v1001_v42 }
  0x22   :  { %984 = vmatpush3.bf16.msra.mxu0 %v983_v13  ;;  %1003 = vmatprep.subr.bf16.mxu1 %v1152_v0 }
  0x23   :  { %985 = vmatprep.subr.bf16.mxu0 %v1152_v0 }
  0x25   :  { %1005 = vmatpush3.bf16.msra.mxu1 %v1004_v45 }
  0x26   :  { %987 = vmatpush3.bf16.msra.mxu0 %v986_v16  ;;  %1006 = vmatprep.subr.bf16.mxu1 %v1152_v0 }
  0x27   :  { %988 = vmatprep.subr.bf16.mxu0 %v1152_v0 }
  0x29   :  { %1008 = vmatpush3.bf16.msra.mxu1 %v1007_v48 }
  0x2a   :  { %990 = vmatpush3.bf16.msra.mxu0 %v989_v19  ;;  %1009 = vmatprep.subr.bf16.mxu1 %v1152_v0 }
  0x2b   :  { %991 = vmatprep.subr.bf16.mxu0 %v1152_v0 }
  0x2d   :  { %1011 = vmatpush3.bf16.msra.mxu1 %v1010_v51  ;;  %v327_v51 = vld [vmem:[#allocation2 + $0x8] sm:$0xff] }
  0x2e   :  { %993 = vmatpush3.bf16.msra.mxu0 %v992_v22  ;;  %1012 = vmatprep.subr.bf16.mxu1 %v1152_v0 }
  0x2f   :  { %994 = vmatprep.subr.bf16.mxu0 %v1152_v0 }
  0x31   :  { %1014 = vmatpush3.bf16.msra.mxu1 %v1013_v54  ;;  %v1021_v54 = vpack.c.bf16 %v329_v52, %v327_v51 }
  0x32   :  { %996 = vmatpush3.bf16.msra.mxu0 %v995_v25  ;;  %1015 = vmatprep.subr.bf16.mxu1 %v1152_v0 }
  0x33   :  { %1022 = vmatprep.subr.bf16.mxu0 %v1021_v54 }
  0x35   :  { %936 = vmatmul.mubr.f32.vlgmr.msra.gmra.mrb[0].mxu0 %v34_v26  ;;  %1017 = vmatpush3.bf16.msra.mxu1 %v1016_v57  ;;  %v333_v57 = vld [vmem:[#allocation2 + $0x38] sm:$0xff] }
  0x36   :  { %433 = vmatprep.mubr.f32.mxu0 %v1154_v1  ;;  %1018 = vmatprep.subr.bf16.mxu1 %v1152_v0  ;;  %v1025_v59 = vpack.c.bf16 %v333_v57, %v331_v56 }
  0x37   :  { %1024 = vmatpush1.bf16.msra.mxu0 %v1023_v58 }
  0x38   :  { %1026 = vmatprep.subr.bf16.mxu0 %v1025_v59 }
  0x39   :  { %1020 = vmatpush3.bf16.msra.mxu1 %v1019_v60  ;;  %v330_v60 = vld [vmem:[#allocation2 + $0x20] sm:$0xff] }
 0x108   :  { %v120_v28 = vpop.f32.mrb[0].mxu0 }
 0x109   :  { %v121_v29 = vadd.f32 %v120_v28, %v51_v27  ;;  %v937_v30 = vpop.f32.mrb[1].mxu0 }
 0x10b   :  { %v125_v31 = vsel %vm124_vm1, %v121_v29, 0.0 }
 0x10c   :  { %126 = vadd.xlane.f32.xlu0 %v125_v31 }
 0x199   :  { %v127_v32 = vpop.xlane.xlu0 %126 }
 0x19a   :  { %v129_v33 = vmul.f32 0.0078125, %v127_v32 }
 0x19c   :  { %v130_v34 = vsub.f32 %v121_v29, %v129_v33 }
 0x19e   :  { %v131_v35 = vmul.f32 %v130_v34, %v130_v34 }
 0x1a0   :  { %v132_v36 = vsel %vm124_vm1, %v131_v35, 0.0 }
 0x1a1   :  { %133 = vadd.xlane.f32.xlu0 %v132_v36 }
 0x22e   :  { %v134_v61 = vpop.xlane.xlu0 %133 }
 0x22f   :  { %v135_v62 = vmul.f32 0.0078125, %v134_v61  ;;  %v332_v61 = vld [vmem:[#allocation2 + $0x30] sm:$0xff] }
 0x231   :  { %v136_v63 = vadd.f32 1e-05, %v135_v62  ;;  %v335_v62 = vld [vmem:[#allocation2 + $0x48] sm:$0xff] }
 0x233   :  { %1093 = vrsqrt.f32 %v136_v63  ;;  %v337_v63 = vld [vmem:[#allocation2 + $0x58] sm:$0xff] }
 0x23d   :  { %v1094_v1 = vpop.eup %1093 }
 0x23e   :  { %v138_v3 = vmul.f32 %v1094_v1, %v130_v34  ;;  %v1027_v1 = vpack.c.bf16 %v332_v61, %v330_v60 }
 0x240   :  { %v139_v5 = vmul.f32 %v138_v3, %v52_v2  ;;  %v1029_v2 = vpack.c.bf16 %v337_v63, %v335_v62  ;;  %v334_v3 = vld [vmem:[#allocation2 + $0x40] sm:$0xff]  ;;  %1028 = vmatpush1.bf16.msra.mxu0 %v1027_v1 }
 0x242   :  { %v140_v6 = vadd.f32 %v139_v5, %v53_v4  ;;  %v336_v4 = vld [vmem:[#allocation2 + $0x50] sm:$0xff]  ;;  %v339_v5 = vld [vmem:[#allocation2 + $0x68] sm:$0xff]  ;;  %1030 = vmatprep.subr.bf16.mxu0 %v1029_v2 }
 0x244   :  { %v142_v7 = vmul.f32 0.70710677, %v140_v6  ;;  %v141_v38 = vmul.f32 0.5, %v140_v6  ;;  %v341_v6 = vld [vmem:[#allocation2 + $0x78] sm:$0xff] }
 0x246   :  { %v143_v8 = vand.u32 2147483647, %v142_v7  ;;  %vm172_vm2 = vcmp.ge.f32.partialorder %v142_v7, 0.0  ;;  %v1031_v7 = vpack.c.bf16 %v336_v4, %v334_v3 }
 0x248   :  { %v144_v0 = vmul.f32 0.5, %v143_v8  ;;  %v166_v27 = vsub.f32 0.0, %v143_v8  ;;  %1032 = vmatpush1.bf16.msra.mxu0 %v1031_v7 }
 0x24a   :  { %v145_v9 = vadd.f32 1.0, %v144_v0  ;;  %v167_v30 = vmul.f32 %v166_v27, %v143_v8  ;;  %v1033_v8 = vpack.c.bf16 %v341_v6, %v339_v5  ;;  %v338_v0 = vld [vmem:[#allocation2 + $0x60] sm:$0xff]  ;;  %v352_v27 = vld [vmem:[#allocation2 + $0xd0] sm:$0xff] }
 0x24c   :  { %1095 = vrcp.f32 %v145_v9  ;;  %v340_v9 = vld [vmem:[#allocation2 + $0x70] sm:$0xff]  ;;  %1034 = vmatprep.subr.bf16.mxu0 %v1033_v8 }
 0x256   :  { %v1096_v10 = vpop.eup %1095 }
 0x257   :  { %v148_v11 = vmul.f32 0.17087276, %v1096_v10 }
 0x259   :  { %v149_v12 = vadd.f32 -0.82215226, %v148_v11  ;;  %v345_v11 = vld [vmem:[#allocation2 + $0x98] sm:$0xff] }
 0x25b   :  { %v150_v13 = vmul.f32 %v1096_v10, %v149_v12  ;;  %v1035_v12 = vpack.c.bf16 %v340_v9, %v338_v0 }
 0x25d   :  { %v151_v14 = vadd.f32 1.4885159, %v150_v13  ;;  %1036 = vmatpush1.bf16.msra.mxu0 %v1035_v12 }
 0x25f   :  { %v152_v15 = vmul.f32 %v1096_v10, %v151_v14  ;;  %v342_v14 = vld [vmem:[#allocation2 + $0x80] sm:$0xff] }
 0x261   :  { %v153_v16 = vadd.f32 -1.135204, %v152_v15  ;;  %v344_v15 = vld [vmem:[#allocation2 + $0x90] sm:$0xff] }
 0x263   :  { %v154_v17 = vmul.f32 %v1096_v10, %v153_v16  ;;  %v347_v16 = vld [vmem:[#allocation2 + $0xa8] sm:$0xff] }
 0x265   :  { %v155_v18 = vadd.f32 0.27886808, %v154_v17  ;;  %v349_v17 = vld [vmem:[#allocation2 + $0xb8] sm:$0xff] }
 0x267   :  { %v156_v19 = vmul.f32 %v1096_v10, %v155_v18  ;;  %v1039_v18 = vpack.c.bf16 %v344_v15, %v342_v14  ;;  %v359_v15 = vlaneseq }
 0x269   :  { %v157_v20 = vadd.f32 -0.18628806, %v156_v19  ;;  %v1041_v19 = vpack.c.bf16 %v349_v17, %v347_v16  ;;  %v360_v16 = vshrl.u32 %v359_v15, 7 }
 0x26b   :  { %v158_v21 = vmul.f32 %v1096_v10, %v157_v20  ;;  %v346_v20 = vld [vmem:[#allocation2 + $0xa0] sm:$0xff]  ;;  %v1341_v17 = vsub.s32 0, %v360_v16 }
 0x26d   :  { %v159_v22 = vadd.f32 0.09678418, %v158_v21  ;;  %v348_v21 = vld [vmem:[#allocation2 + $0xb0] sm:$0xff] }
 0x26f   :  { %v160_v23 = vmul.f32 %v1096_v10, %v159_v22  ;;  %v351_v22 = vld [vmem:[#allocation2 + $0xc8] sm:$0xff] }
 0x271   :  { %v161_v24 = vadd.f32 0.37409195, %v160_v23  ;;  %v353_v23 = vld [vmem:[#allocation2 + $0xd8] sm:$0xff] }
 0x273   :  { %v162_v25 = vmul.f32 %v1096_v10, %v161_v24  ;;  %v1043_v24 = vpack.c.bf16 %v348_v21, %v346_v20  ;;  %v1348_v20 = vsub.s32 1, %v360_v16 }
 0x275   :  { %v163_v26 = vadd.f32 1.0000237, %v162_v25  ;;  %v1045_v25 = vpack.c.bf16 %v353_v23, %v351_v22 }
 0x277   :  { %v164_v28 = vmul.f32 %v1096_v10, %v163_v26  ;;  %v350_v26 = vld [vmem:[#allocation2 + $0xc0] sm:$0xff] }
 0x279   :  { %v165_v29 = vadd.f32 -1.2655122, %v164_v28  ;;  %v355_v28 = vld [vmem:[#allocation2 + $0xe8] sm:$0xff] }
 0x27b   :  { %v168_v31 = vadd.f32 %v167_v30, %v165_v29  ;;  %v357_v29 = vld [vmem:[#allocation2 + $0xf8] sm:$0xff]  ;;  %v1047_v30 = vpack.c.bf16 %v352_v27, %v350_v26 }
 0x27d   :  { %v169_v32 = vmul.f32 1.442695, %v168_v31  ;;  %v1049_v31 = vpack.c.bf16 %v357_v29, %v355_v28 }
 0x27f   :  { %1097 = vpow2.f32 %v169_v32  ;;  %v354_v32 = vld [vmem:[#allocation2 + $0xe0] sm:$0xff] }
 0x289   :  { %v1098_v33 = vpop.eup %1097 }
 0x28a   :  { %v171_v34 = vmul.f32 %v1098_v33, %v1096_v10  ;;  %v343_v10 = vld [vmem:[#allocation2 + $0x88] sm:$0xff]  ;;  %v356_v33 = vld [vmem:[#allocation2 + $0xf0] sm:$0xff] }
 0x28b   :  { %v1037_v13 = vpack.c.bf16 %v345_v11, %v343_v10 }
 0x28c   :  { %v173_v35 = vsub.f32 1.0, %v171_v34  ;;  %v810_v36 = vadd.f32 -1.0, %v171_v34  ;;  %v1051_v34 = vpack.c.bf16 %v356_v33, %v354_v32 }
 0x28d   :  { %1038 = vmatprep.subr.bf16.mxu0 %v1037_v13 }
 0x28e   :  { %v175_v37 = vsel %vm172_vm2, %v173_v35, %v810_v36  ;;  %1040 = vmatpush1.bf16.msra.mxu0 %v1039_v18  ;;  %v1343_v18 = vand.u32 127, %v359_v15 }
 0x28f   :  { %v176_v39 = vadd.f32 1.0, %v175_v37  ;;  %1042 = vmatprep.subr.bf16.mxu0 %v1041_v19  ;;  %v828_v19 = vld [vmem:[%s1566_s4 + $0x6] ss:$8 sm:$0x3] }
 0x290   :  { %v362_v21 = vrot.slane %v828_v19, %v1341_v17  ;;  %v1352_v22 = vadd.s32 128, %v1343_v18  ;;  %v366_v23 = vrot.slane %v828_v19, %v1348_v20  ;;  %vm445_vm4 = vcmp.lt.s32.totalorder %v1343_v18, 64  ;;  %v664_v19 = vld [vmem:[%s1565_s3 + $0x30] sm:$0xff] }
 0x291   :  { %v177_v40 = vmul.f32 %v176_v39, %v141_v38  ;;  %v196_v39 = vld [vmem:[%s1566_s4 + $0x4] ss:$0 sm:$0xff]  ;;  %vm459_vm6 = vcmp.ge.s32.totalorder %v1343_v18, 64  ;;  %vm774_vm10 = vcmp.ge.s32.totalorder %v1343_v18, 3  ;;  %vm775_vm11 = vcmp.lt.s32.totalorder %v1343_v18, 8 }
 0x292   :  { %1044 = vmatpush1.bf16.msra.mxu0 %v1043_v24  ;;  %vm478_vm5 = vcmp.lt.s32.totalorder %v1352_v22, 192  ;;  %vm492_vm7 = vcmp.ge.s32.totalorder %v1352_v22, 192  ;;  %vm1538_vm12 = vmand %vm774_vm10, %vm775_vm11  ;;  %vm767_vm0 = vcmp.eq.s32.totalorder %v1343_v18, 1  ;;  %vm800_vm2 = vcmp.eq.s32.totalorder %v1343_v18, 8 }
 0x293   :  { %971 = vmatmul.mubr.f32.vlgmr.msra.gmra.mrb[0].mxu1 %v177_v40  ;;  %1046 = vmatprep.subr.bf16.mxu0 %v1045_v25 }
 0x296   :  { %1048 = vmatpush1.bf16.msra.mxu0 %v1047_v30 }
 0x297   :  { %1050 = vmatprep.subr.bf16.mxu0 %v1049_v31 }
 0x29a   :  { %1052 = vmatpush1.bf16.msra.mxu0 %v1051_v34 }
 0x366   :  { %v264_v42 = vpop.f32.mrb[0].mxu1 }
 0x367   :  { %v265_v43 = vadd.f32 %v264_v42, %v195_v41  ;;  %v972_v44 = vpop.f32.mrb[1].mxu1  ;;  %v197_v41 = vld [vmem:[%s1566_s4 + $0x5] ss:$0 sm:$0xff] }
 0x369   :  { %v268_v45 = vsel %vm124_vm1, %v265_v43, 0.0 }
 0x36a   :  { %269 = vadd.xlane.f32.xlu1 %v268_v45 }
 0x3f7   :  { %v270_v46 = vpop.xlane.xlu1 %269 }
 0x3f8   :  { %v271_v47 = vmul.f32 0.0078125, %v270_v46 }
 0x3fa   :  { %v1329_v48 = vsub.f32 %v265_v43, %v271_v47 }
 0x3fc   :  { %v273_v49 = vmul.f32 %v1329_v48, %v1329_v48 }
 0x3fe   :  { %v274_v50 = vsel %vm124_vm1, %v273_v49, 0.0 }
 0x3ff   :  { %275 = vadd.xlane.f32.xlu1 %v274_v50 }
 0x48c   :  { %v276_v35 = vpop.xlane.xlu1 %275 }
 0x48d   :  { %v277_v36 = vmul.f32 0.0078125, %v276_v35 }
 0x48f   :  { %v278_v37 = vadd.f32 1e-05, %v277_v36 }
 0x491   :  { %1099 = vrsqrt.f32 %v278_v37 }
 0x49b   :  { %v1100_v38 = vpop.eup %1099 }
 0x49c   :  { %v280_v40 = vmul.f32 %v1100_v38, %v1329_v48 }
 0x49e   :  { %v281_v42 = vmul.f32 %v280_v40, %v196_v39 }
 0x4a0   :  { %v282_v43 = vadd.f32 %v281_v42, %v197_v41 }
 0x4a2   :  { %v284_v44 = vmul.f32 0.70710677, %v282_v43  ;;  %v283_v12 = vmul.f32 0.5, %v282_v43 }
 0x4a4   :  { %v285_v45 = vand.u32 2147483647, %v284_v44  ;;  %vm314_vm3 = vcmp.ge.f32.partialorder %v284_v44, 0.0 }
 0x4a6   :  { %v286_v46 = vmul.f32 0.5, %v285_v45  ;;  %v308_v2 = vsub.f32 0.0, %v285_v45 }
 0x4a8   :  { %v287_v47 = vadd.f32 1.0, %v286_v46  ;;  %v309_v5 = vmul.f32 %v308_v2, %v285_v45  ;;  %v676_v2 = vld [vmem:[%s1565_s3 + $0x90] sm:$0xff] }
 0x4aa   :  { %1101 = vrcp.f32 %v287_v47 }
 0x4b4   :  { %v1102_v49 = vpop.eup %1101 }
 0x4b5   :  { %v290_v50 = vmul.f32 0.17087276, %v1102_v49 }
 0x4b7   :  { %v291_v51 = vadd.f32 -0.82215226, %v290_v50 }
 0x4b9   :  { %v292_v52 = vmul.f32 %v1102_v49, %v291_v51 }
 0x4bb   :  { %v293_v53 = vadd.f32 1.4885159, %v292_v52 }
 0x4bd   :  { %v294_v54 = vmul.f32 %v1102_v49, %v293_v53 }
 0x4bf   :  { %v295_v55 = vadd.f32 -1.135204, %v294_v54 }
 0x4c1   :  { %v296_v56 = vmul.f32 %v1102_v49, %v295_v55 }
 0x4c3   :  { %v297_v48 = vadd.f32 0.27886808, %v296_v56 }
 0x4c5   :  { %v298_v57 = vmul.f32 %v1102_v49, %v297_v48 }
 0x4c7   :  { %v299_v58 = vadd.f32 -0.18628806, %v298_v57 }
 0x4c9   :  { %v300_v59 = vmul.f32 %v1102_v49, %v299_v58 }
 0x4cb   :  { %v301_v60 = vadd.f32 0.09678418, %v300_v59 }
 0x4cd   :  { %v302_v61 = vmul.f32 %v1102_v49, %v301_v60  ;;  %v674_v60 = vld [vmem:[%s1565_s3 + $0x80] sm:$0xff] }
 0x4cf   :  { %v303_v62 = vadd.f32 0.37409195, %v302_v61  ;;  %v675_v61 = vld [vmem:[%s1565_s3 + $0x88] sm:$0xff] }
 0x4d1   :  { %v304_v63 = vmul.f32 %v1102_v49, %v303_v62  ;;  %v658_v62 = vld [vmem:[%s1565_s3] sm:$0xff] }
 0x4d3   :  { %v305_v1 = vadd.f32 1.0000237, %v304_v63  ;;  %v1053_v63 = vpack.c.bf16 %v675_v61, %v674_v60 }
 0x4d5   :  { %v306_v3 = vmul.f32 %v1102_v49, %v305_v1  ;;  %v659_v1 = vld [vmem:[%s1565_s3 + $0x8] sm:$0xff]  ;;  %1054 = vmatprep.subr.bf16.mxu1 %v1053_v63 }
 0x4d7   :  { %v307_v4 = vadd.f32 -1.2655122, %v306_v3  ;;  %v677_v3 = vld [vmem:[%s1565_s3 + $0x98] sm:$0xff] }
 0x4d9   :  { %v310_v6 = vadd.f32 %v309_v5, %v307_v4  ;;  %v1055_v4 = vpack.c.bf16 %v659_v1, %v658_v62  ;;  %v1057_v5 = vpack.c.bf16 %v677_v3, %v676_v2  ;;  %v829_v1 = vld [vmem:[%s1566_s4 + $0x7] ss:$8 sm:$0x3]  ;;  %v830_v2 = vld [vmem:[%s1566_s4 + $0x10] ss:$8 sm:$0x3] }
 0x4da   :  { %v561_v3 = vrot.slane %v829_v1, %v1341_v17  ;;  %v574_v22 = vrot.slane %v830_v2, %v1341_v17 }
 0x4db   :  { %v311_v7 = vmul.f32 1.442695, %v310_v6  ;;  %v660_v6 = vld [vmem:[%s1565_s3 + $0x10] sm:$0xff]  ;;  %1056 = vmatpush3.bf16.msra.mxu1 %v1055_v4 }
 0x4dc   :  { %1058 = vmatprep.subr.bf16.mxu1 %v1057_v5  ;;  %v565_v5 = vrot.slane %v829_v1, %v1348_v20 }
 0x4dd   :  { %1103 = vpow2.f32 %v311_v7  ;;  %v661_v7 = vld [vmem:[%s1565_s3 + $0x18] sm:$0xff] }
 0x4e7   :  { %v1104_v8 = vpop.eup %1103 }
 0x4e8   :  { %v313_v0 = vmul.f32 %v1104_v8, %v1102_v49  ;;  %v678_v8 = vld [vmem:[%s1565_s3 + $0xa0] sm:$0xff] }
 0x4ea   :  { %v315_v9 = vsub.f32 1.0, %v313_v0  ;;  %v827_v10 = vadd.f32 -1.0, %v313_v0  ;;  %v679_v0 = vld [vmem:[%s1565_s3 + $0xa8] sm:$0xff] }
 0x4ec   :  { %v317_v11 = vsel %vm314_vm3, %v315_v9, %v827_v10  ;;  %v1059_v9 = vpack.c.bf16 %v661_v7, %v660_v6  ;;  %v1061_v10 = vpack.c.bf16 %v679_v0, %v678_v8  ;;  %v578_v0 = vrot.slane %v830_v2, %v1348_v20 }
 0x4ed   :  { %v318_v13 = vadd.f32 1.0, %v317_v11  ;;  %v662_v11 = vld [vmem:[%s1565_s3 + $0x20] sm:$0xff]  ;;  %vm799_vm3 = vcmp.lt.s32.totalorder %v1343_v18, 3 }
 0x4ee   :  { %1060 = vmatpush3.bf16.msra.mxu1 %v1059_v9 }
 0x4ef   :  { %v319_v14 = vmul.f32 %v318_v13, %v283_v12  ;;  %v663_v12 = vld [vmem:[%s1565_s3 + $0x28] sm:$0xff]  ;;  %v680_v13 = vld [vmem:[%s1565_s3 + $0xb0] sm:$0xff]  ;;  %1062 = vmatprep.subr.bf16.mxu1 %v1061_v10 }
 0x4f0   :  { %v1063_v15 = vpack.c.bf16 %v663_v12, %v662_v11 }
 0x4f1   :  { %434 = vmatmul.mubr.f32.vlgmr.msra.gmra.mrb[2].mxu0 %v319_v14  ;;  %v681_v14 = vld [vmem:[%s1565_s3 + $0xb8] sm:$0xff] }
 0x4f2   :  { %v1065_v16 = vpack.c.bf16 %v681_v14, %v680_v13  ;;  %1064 = vmatpush3.bf16.msra.mxu1 %v1063_v15 }
 0x4f4   :  { %1066 = vmatprep.subr.bf16.mxu1 %v1065_v16 }
 0x5c4   :  { %v435_v24 = vpop.f32.mrb[2].mxu0 }
 0x5c5   :  { %v436_v25 = vadd.f32 %v435_v24, %v362_v21  ;;  %v437_v26 = vpop.f32.mrb[3].mxu0  ;;  %v665_v21 = vld [vmem:[%s1565_s3 + $0x38] sm:$0xff]  ;;  %v683_v24 = vld [vmem:[%s1565_s3 + $0xc8] sm:$0xff] }
 0x5c6   :  { %v438_v27 = vadd.f32 %v437_v26, %v366_v23  ;;  %v682_v23 = vld [vmem:[%s1565_s3 + $0xc0] sm:$0xff] }
 0x5c7   :  { %v449_v28 = vsel %vm445_vm4, %v436_v25, 0.0  ;;  %v465_v32 = vsel %vm459_vm6, %v436_v25, 0.0  ;;  %v1069_v26 = vpack.c.bf16 %v683_v24, %v682_v23 }
 0x5c8   :  { %v451_v29 = vsel %vm124_vm1, %v449_v28, 0.0  ;;  %v482_v30 = vsel %vm478_vm5, %v438_v27, 0.0  ;;  %v498_v33 = vsel %vm492_vm7, %v438_v27, 0.0  ;;  %v467_v34 = vsel %vm124_vm1, %v465_v32, 0.0  ;;  %v667_v28 = vld [vmem:[%s1565_s3 + $0x48] sm:$0xff] }
 0x5c9   :  { %454 = vadd.xlane.f32.xlu1 %v451_v29  ;;  %v484_v31 = vsel %vm124_vm1, %v482_v30, 0.0  ;;  %v500_v35 = vsel %vm124_vm1, %v498_v33, 0.0  ;;  %v684_v29 = vld [vmem:[%s1565_s3 + $0xd0] sm:$0xff]  ;;  %v685_v30 = vld [vmem:[%s1565_s3 + $0xd8] sm:$0xff] }
 0x5ca   :  { %486 = vadd.xlane.f32.xlu0 %v484_v31  ;;  %v1073_v32 = vpack.c.bf16 %v685_v30, %v684_v29  ;;  %v668_v33 = vld [vmem:[%s1565_s3 + $0x50] sm:$0xff] }
 0x5cd   :  { %470 = vadd.xlane.f32.xlu1 %v467_v34  ;;  %v669_v34 = vld [vmem:[%s1565_s3 + $0x58] sm:$0xff] }
 0x5ce   :  { %502 = vadd.xlane.f32.xlu0 %v500_v35  ;;  %v686_v35 = vld [vmem:[%s1565_s3 + $0xe0] sm:$0xff] }
 0x656   :  { %v455_v36 = vpop.xlane.xlu1 %454 }
 0x657   :  { %v487_v37 = vpop.xlane.xlu0 %486  ;;  %v456_v38 = vmul.f32 0.015625, %v455_v36  ;;  %v687_v36 = vld [vmem:[%s1565_s3 + $0xe8] sm:$0xff] }
 0x658   :  { %v488_v39 = vmul.f32 0.015625, %v487_v37  ;;  %v1075_v37 = vpack.c.bf16 %v669_v34, %v668_v33 }
 0x659   :  { %v457_v43 = vsel %vm445_vm4, %v456_v38, 0.0  ;;  %v1077_v38 = vpack.c.bf16 %v687_v36, %v686_v35 }
 0x65a   :  { %v471_v40 = vpop.xlane.xlu1 %470  ;;  %v490_v45 = vsel %vm478_vm5, %v488_v39, 0.0  ;;  %v670_v39 = vld [vmem:[%s1565_s3 + $0x60] sm:$0xff] }
 0x65b   :  { %v472_v41 = vmul.f32 0.015625, %v471_v40  ;;  %v503_v42 = vpop.xlane.xlu0 %502  ;;  %v671_v40 = vld [vmem:[%s1565_s3 + $0x68] sm:$0xff] }
 0x65c   :  { %v504_v44 = vmul.f32 0.015625, %v503_v42  ;;  %v689_v42 = vld [vmem:[%s1565_s3 + $0xf8] sm:$0xff] }
 0x65d   :  { %v473_v46 = vsel %vm459_vm6, %v472_v41, %v457_v43  ;;  %v688_v41 = vld [vmem:[%s1565_s3 + $0xf0] sm:$0xff]  ;;  %v1079_v43 = vpack.c.bf16 %v671_v40, %v670_v39 }
 0x65e   :  { %v506_v47 = vsel %vm492_vm7, %v504_v44, %v490_v45  ;;  %v1379_v49 = vsub.f32 %v436_v25, %v473_v46  ;;  %v1067_v25 = vpack.c.bf16 %v665_v21, %v664_v19  ;;  %v1081_v44 = vpack.c.bf16 %v689_v42, %v688_v41  ;;  %v672_v45 = vld [vmem:[%s1565_s3 + $0x70] sm:$0xff]  ;;  %v673_v46 = vld [vmem:[%s1565_s3 + $0x78] sm:$0xff] }
 0x65f   :  { %v1381_v50 = vsub.f32 %v438_v27, %v506_v47  ;;  %v666_v27 = vld [vmem:[%s1565_s3 + $0x40] sm:$0xff]  ;;  %v1083_v47 = vpack.c.bf16 %v673_v46, %v672_v45 }
 0x660   :  { %v509_v51 = vmul.f32 %v1379_v49, %v1379_v49  ;;  %1068 = vmatpush3.bf16.msra.mxu1 %v1067_v25  ;;  %v1071_v31 = vpack.c.bf16 %v667_v28, %v666_v27 }
 0x661   :  { %v510_v52 = vmul.f32 %v1381_v50, %v1381_v50  ;;  %1070 = vmatprep.subr.bf16.mxu1 %v1069_v26 }
 0x662   :  { %v511_v53 = vsel %vm445_vm4, %v509_v51, 0.0  ;;  %v521_v48 = vsel %vm459_vm6, %v509_v51, 0.0 }
 0x663   :  { %v513_v54 = vsel %vm124_vm1, %v511_v53, 0.0  ;;  %v532_v55 = vsel %vm478_vm5, %v510_v52, 0.0  ;;  %v542_v57 = vsel %vm492_vm7, %v510_v52, 0.0  ;;  %v523_v58 = vsel %vm124_vm1, %v521_v48, 0.0 }
 0x664   :  { %516 = vadd.xlane.f32.xlu1 %v513_v54  ;;  %v534_v56 = vsel %vm124_vm1, %v532_v55, 0.0  ;;  %v544_v59 = vsel %vm124_vm1, %v542_v57, 0.0  ;;  %1072 = vmatpush3.bf16.msra.mxu1 %v1071_v31  ;;  %vm766_vm1 = vcmp.eq.s32.totalorder %v1343_v18, 0 }
 0x665   :  { %536 = vadd.xlane.f32.xlu0 %v534_v56  ;;  %1074 = vmatprep.subr.bf16.mxu1 %v1073_v32 }
 0x668   :  { %526 = vadd.xlane.f32.xlu1 %v523_v58  ;;  %1076 = vmatpush3.bf16.msra.mxu1 %v1075_v37 }
 0x669   :  { %546 = vadd.xlane.f32.xlu0 %v544_v59  ;;  %1078 = vmatprep.subr.bf16.mxu1 %v1077_v38 }
 0x66c   :  { %1080 = vmatpush3.bf16.msra.mxu1 %v1079_v43 }
 0x66d   :  { %1082 = vmatprep.subr.bf16.mxu1 %v1081_v44 }
 0x670   :  { %1084 = vmatpush3.bf16.msra.mxu1 %v1083_v47 }
 0x6f1   :  { %v517_v51 = vpop.xlane.xlu1 %516 }
 0x6f2   :  { %v537_v52 = vpop.xlane.xlu0 %536  ;;  %v518_v53 = vmul.f32 0.015625, %v517_v51 }
 0x6f3   :  { %v538_v54 = vmul.f32 0.015625, %v537_v52 }
 0x6f4   :  { %v519_v57 = vsel %vm445_vm4, %v518_v53, 0.0 }
 0x6f5   :  { %v527_v55 = vpop.xlane.xlu1 %526  ;;  %v540_v59 = vsel %vm478_vm5, %v538_v54, 0.0 }
 0x6f6   :  { %v528_v56 = vmul.f32 0.015625, %v527_v55  ;;  %v547_v48 = vpop.xlane.xlu0 %546 }
 0x6f7   :  { %v548_v58 = vmul.f32 0.015625, %v547_v48 }
 0x6f8   :  { %v529_v60 = vsel %vm459_vm6, %v528_v56, %v519_v57 }
 0x6f9   :  { %v551_v61 = vadd.f32 1e-05, %v529_v60  ;;  %v550_v62 = vsel %vm492_vm7, %v548_v58, %v540_v59 }
 0x6fa   :  { %v552_v63 = vadd.f32 1e-05, %v550_v62 }
 0x6fb   :  { %1105 = vrsqrt.f32 %v551_v61 }
 0x6fc   :  { %1107 = vrsqrt.f32 %v552_v63 }
 0x705   :  { %v1106_v4 = vpop.eup %1105 }
 0x706   :  { %v1108_v6 = vpop.eup %1107  ;;  %v555_v7 = vmul.f32 %v1106_v4, %v1379_v49 }
 0x707   :  { %v556_v8 = vmul.f32 %v1108_v6, %v1381_v50 }
 0x708   :  { %v568_v9 = vmul.f32 %v561_v3, %v555_v7 }
 0x709   :  { %v569_v10 = vmul.f32 %v565_v5, %v556_v8 }
 0x70a   :  { %v1515_v11 = vadd.f32 %v574_v22, %v568_v9 }
 0x70b   :  { %v1517_v12 = vadd.f32 %v578_v0, %v569_v10 }
 0x70c   :  { %v1520_v13 = vmul.f32 0.70710677, %v1515_v11 }
 0x70d   :  { %v1523_v14 = vmul.f32 0.70710677, %v1517_v12 }
 0x70e   :  { %v587_v17 = vand.u32 2147483647, %v1520_v13  ;;  %vm645_vm8 = vcmp.ge.f32.partialorder %v1520_v13, 0.0  ;;  %v657_v13 = vld [vmem:[%s1566_s4 + $0x11] ss:$0 sm:$0xff] }
 0x70f   :  { %v588_v49 = vand.u32 2147483647, %v1523_v14  ;;  %vm646_vm9 = vcmp.ge.f32.partialorder %v1523_v14, 0.0 }
 0x710   :  { %v589_v15 = vmul.f32 0.5, %v587_v17  ;;  %v633_v48 = vsub.f32 0.0, %v587_v17 }
 0x711   :  { %v590_v50 = vmul.f32 0.5, %v588_v49  ;;  %v634_v58 = vsub.f32 0.0, %v588_v49 }
 0x712   :  { %v591_v16 = vadd.f32 1.0, %v589_v15  ;;  %v635_v62 = vmul.f32 %v633_v48, %v587_v17 }
 0x713   :  { %v592_v20 = vadd.f32 1.0, %v590_v50  ;;  %v636_v1 = vmul.f32 %v634_v58, %v588_v49  ;;  %v583_v50 = vmul.f32 0.5, %v1515_v11 }
 0x714   :  { %1109 = vrcp.f32 %v591_v16 }
 0x715   :  { %1111 = vrcp.f32 %v592_v20  ;;  %v584_v20 = vmul.f32 0.5, %v1517_v12 }
 0x71e   :  { %v1110_v19 = vpop.eup %1109 }
 0x71f   :  { %v1112_v21 = vpop.eup %1111  ;;  %v597_v23 = vmul.f32 0.17087276, %v1110_v19 }
 0x720   :  { %v598_v24 = vmul.f32 0.17087276, %v1112_v21 }
 0x721   :  { %v599_v25 = vadd.f32 -0.82215226, %v597_v23 }
 0x722   :  { %v600_v26 = vadd.f32 -0.82215226, %v598_v24 }
 0x723   :  { %v601_v27 = vmul.f32 %v1110_v19, %v599_v25 }
 0x724   :  { %v602_v28 = vmul.f32 %v1112_v21, %v600_v26 }
 0x725   :  { %v603_v29 = vadd.f32 1.4885159, %v601_v27 }
 0x726   :  { %v604_v30 = vadd.f32 1.4885159, %v602_v28  ;;  %v833_v28 = vadd.s32 4294967293, %v1343_v18 }
 0x727   :  { %v605_v31 = vmul.f32 %v1110_v19, %v603_v29 }
 0x728   :  { %v606_v32 = vmul.f32 %v1112_v21, %v604_v30  ;;  %v792_v29 = vcvt.s32.f32 %v833_v28 }
 0x729   :  { %v607_v33 = vadd.f32 -1.135204, %v605_v31 }
 0x72a   :  { %v608_v34 = vadd.f32 -1.135204, %v606_v32 }
 0x72b   :  { %v609_v35 = vmul.f32 %v1110_v19, %v607_v33 }
 0x72c   :  { %v610_v36 = vmul.f32 %v1112_v21, %v608_v34 }
 0x72d   :  { %v611_v37 = vadd.f32 0.27886808, %v609_v35 }
 0x72e   :  { %v612_v38 = vadd.f32 0.27886808, %v610_v36 }
 0x72f   :  { %v613_v39 = vmul.f32 %v1110_v19, %v611_v37 }
 0x730   :  { %v614_v40 = vmul.f32 %v1112_v21, %v612_v38 }
 0x731   :  { %v615_v41 = vadd.f32 -0.18628806, %v613_v39 }
 0x732   :  { %v616_v42 = vadd.f32 -0.18628806, %v614_v40 }
 0x733   :  { %v617_v43 = vmul.f32 %v1110_v19, %v615_v41 }
 0x734   :  { %v618_v44 = vmul.f32 %v1112_v21, %v616_v42 }
 0x735   :  { %v619_v45 = vadd.f32 0.09678418, %v617_v43  ;;  %v1155_v43 = vmov 90.0  }
 0x736   :  { %v620_v46 = vadd.f32 0.09678418, %v618_v44  ;;  %v768_v44 = vsel %vm767_vm0, 80.0, %v1155_v43 }
 0x737   :  { %v621_v47 = vmul.f32 %v1110_v19, %v619_v45 }
 0x738   :  { %v622_v51 = vmul.f32 %v1112_v21, %v620_v46  ;;  %v769_v46 = vsel %vm766_vm1, 100.0, %v768_v44 }
 0x739   :  { %v623_v52 = vadd.f32 0.37409195, %v621_v47  ;;  %v1156_v47 = vmov 10.0  }
 0x73a   :  { %v624_v53 = vadd.f32 0.37409195, %v622_v51  ;;  %v770_v51 = vsel %vm767_vm0, 20.0, %v1156_v47 }
 0x73b   :  { %v625_v54 = vmul.f32 %v1110_v19, %v623_v52 }
 0x73c   :  { %v626_v55 = vmul.f32 %v1112_v21, %v624_v53 }
 0x73d   :  { %v627_v56 = vadd.f32 1.0000237, %v625_v54  ;;  %v771_v54 = vsel %vm766_vm1, 0.0, %v770_v51 }
 0x73e   :  { %v628_v57 = vadd.f32 1.0000237, %v626_v55 }
 0x73f   :  { %v629_v59 = vmul.f32 %v1110_v19, %v627_v56 }
 0x740   :  { %v630_v60 = vmul.f32 %v1112_v21, %v628_v57 }
 0x741   :  { %v631_v61 = vadd.f32 -1.2655122, %v629_v59 }
 0x742   :  { %v632_v63 = vadd.f32 -1.2655122, %v630_v60 }
 0x743   :  { %v637_v2 = vadd.f32 %v635_v62, %v631_v61 }
 0x744   :  { %v638_v3 = vadd.f32 %v636_v1, %v632_v63 }
 0x745   :  { %v639_v4 = vmul.f32 1.442695, %v637_v2 }
 0x746   :  { %v641_v5 = vmul.f32 1.442695, %v638_v3 }
 0x747   :  { %1113 = vpow2.f32 %v639_v4 }
 0x748   :  { %1115 = vpow2.f32 %v641_v5 }
 0x751   :  { %v1114_v6 = vpop.eup %1113 }
 0x752   :  { %v1116_v22 = vpop.eup %1115  ;;  %v643_v7 = vmul.f32 %v1114_v6, %v1110_v19 }
 0x753   :  { %v644_v8 = vmul.f32 %v1116_v22, %v1112_v21 }
 0x754   :  { %v647_v0 = vsub.f32 1.0, %v643_v7  ;;  %v831_v9 = vadd.f32 -1.0, %v643_v7 }
 0x755   :  { %v648_v10 = vsub.f32 1.0, %v644_v8  ;;  %v832_v15 = vadd.f32 -1.0, %v644_v8 }
 0x756   :  { %v651_v17 = vsel %vm645_vm8, %v647_v0, %v831_v9 }
 0x757   :  { %v652_v49 = vsel %vm646_vm9, %v648_v10, %v832_v15  ;;  %v653_v16 = vadd.f32 1.0, %v651_v17 }
 0x758   :  { %v654_v23 = vadd.f32 1.0, %v652_v49 }
 0x759   :  { %v655_v24 = vmul.f32 %v653_v16, %v583_v50 }
 0x75a   :  { %v656_v25 = vmul.f32 %v654_v23, %v584_v20 }
 0x75c   :  { %754 = vmatprep.mubr.f32.mxu1 %v656_v25 }
 0x75d   :  { %755 = vmatmul.mubr.f32.vlgmr.msra.gmra.mrb[2].mxu1 %v655_v24 }
 0x830   :  { %v900_v19 = vpop.f32.mrb[2].mxu1 }
 0x831   :  { %v901_v14 = vpop.f32.mrb[3].mxu1 }
 0x832   :  { %v902_v21 = vadd.f32 %v901_v14, %v900_v19 }
 0x834   :  { %v757_v12 = vadd.f32 %v902_v21, %v657_v13 }
 0x836   :  { %v777_v26 = vsel %vm1538_vm12, %v757_v12, -1e+30  ;;  %v760_v38 = vsub.f32 0.0, %v757_v12 }
 0x837   :  { %v779_v27 = vsel %vm778_vm13, %v777_v26, -inf }
 0x838   :  { %780 = vmax.xlane.f32.xlu0 %v779_v27  ;;  %v761_v39 = vmul.f32 1.442695, %v760_v38 }
 0x8c5   :  { %v781_v30 = vpop.xlane.xlu0 %780 }
 0x8c6   :  { %v782_v31 = vsub.f32 %v757_v12, %v781_v30  ;;  %vm793_vm14 = vcmp.ge.f32.partialorder %v757_v12, %v781_v30 }
 0x8c7   :  { %vm794_vm15 = vmand %vm1538_vm12, %vm793_vm14 }
 0x8c8   :  { %v783_v32 = vmul.f32 1.442695, %v782_v31  ;;  %v795_v33 = vsel %vm794_vm15, %v792_v29, 1e+09 }
 0x8c9   :  { %v796_v34 = vsel %vm778_vm13, %v795_v33, inf }
 0x8ca   :  { %1117 = vpow2.f32 %v783_v32  ;;  %797 = vmin.xlane.f32.xlu0 %v796_v34 }
 0x8cb   :  { %1119 = vpow2.f32 %v761_v39 }
 0x8d4   :  { %v1118_v35 = vpop.eup %1117 }
 0x8d5   :  { %v785_v36 = vsel %vm1538_vm12, %v1118_v35, 0.0  ;;  %v1120_v40 = vpop.eup %1119 }
 0x8d6   :  { %v786_v37 = vsel %vm778_vm13, %v785_v36, 0.0  ;;  %v763_v41 = vadd.f32 1.0, %v1120_v40 }
 0x8d7   :  { %787 = vadd.xlane.f32.xlu1 %v786_v37 }
 0x8d8   :  { %1121 = vrcp.f32 %v763_v41 }
 0x8e2   :  { %v1122_v45 = vpop.eup %1121 }
 0x8e3   :  { %v772_v52 = vmul.f32 %v1122_v45, %v769_v46 }
 0x8e5   :  { %v773_v57 = vadd.f32 %v772_v52, %v771_v54 }
 0x957   :  { %v798_v53 = vpop.xlane.xlu0 %797 }
 0x958   :  { %v801_v48 = vsel %vm800_vm2, %v798_v53, 0.0 }
 0x964   :  { %v788_v42 = vpop.xlane.xlu1 %787 }
 0x965   :  { %1123 = vrcp.f32 %v788_v42 }
 0x96f   :  { %v1124_v55 = vpop.eup %1123 }
 0x970   :  { %v790_v56 = vmul.f32 %v1124_v55, %v785_v36 }
 0x972   :  { %v802_v58 = vsel %vm775_vm11, %v790_v56, %v801_v48 }
 0x973   :  { %v803_v59 = vsel %vm799_vm3, %v773_v57, %v802_v58 }
 0x974   :  { %804 = vst.msk [vmem:[%s1567_s5] sm:$0x3] %vm778_vm13, %v803_v59 }
 0x975   :  { %809 = vsyncpa [#allocation3], 1 }

</bundles_post_ra>
